<compile_context>
chip_gen: v5e
topology: v5e:2x2
jax: 0.10.0
libtpu: 0.0.40
codegen_flags: <defaults>
</compile_context>

<pallas_src>
import jax
import jax.numpy as jnp
from jax.experimental import pallas as pl
from jax.experimental.pallas import tpu as pltpu

# ---- model hyper-params (small, consistent with the module) ----------------
D_MODEL = 32
N_HEAD = 4
DIM_FF = 64
NUM_LAYERS = 2
HEAD_DIM = D_MODEL // N_HEAD
LN_EPS = 1e-5
# fused per-layer params: (wqk, bqk, wv, bv, wo, bo, g1, be1, w1, b1, w2, b2, g2, be2)
FUSED_PARAMS_PER_LAYER = 14


def _layer_norm(x, gamma, beta):
    mean = jnp.mean(x, axis=-1, keepdims=True)
    var = jnp.mean((x - mean) ** 2, axis=-1, keepdims=True)
    return (x - mean) * jax.lax.rsqrt(var + LN_EPS) * gamma + beta


def fused_encoder_kernel(*refs):
    """All encoder layers for one batch chunk, entirely in VMEM.

    refs = (x, pos, <num_layers * 14 fused parameter refs>, out, feat)
    """
    x_ref, pos_ref = refs[0], refs[1]
    out_ref, feat_ref = refs[-2], refs[-1]
    param_refs = refs[2:-2]

    num_layers = feat_ref.shape[0]
    bc, seq, dm = x_ref.shape
    rows = bc * seq
    nh, hd = N_HEAD, HEAD_DIM

    # (bc, S, D) -> (bc*S, D): leading-dim merge only (lane dim unchanged).
    xf = x_ref[...].astype(jnp.float32).reshape(rows, dm)
    posf = pos_ref[...].astype(jnp.float32).reshape(rows, dm)

    def to_head_batch(t):
        # (rows, D) -> (nh*bc, seq, hd) with batch index n = h*bc + b.
        # Built from lane slices + a major-axis stack (sublane-safe; no 4-D
        # transpose needed for the Mosaic lowering).
        heads = [t[:, h * hd:(h + 1) * hd].reshape(bc, seq, hd)
                 for h in range(nh)]
        return jnp.stack(heads, axis=0).reshape(nh * bc, seq, hd)

    for layer in range(num_layers):       # static loop; layers stay in VMEM
        (wqk, bqk, wv, bv, wo, bo, g1, be1,
         w1, b1, w2, b2, g2, be2) = [
            r[...]
            for r in param_refs[layer * FUSED_PARAMS_PER_LAYER:
                                (layer + 1) * FUSED_PARAMS_PER_LAYER]
        ]

        # --- multi-head self-attention (q = k = src + pos, v = src) ---------
        qk_in = (xf + posf).astype(jnp.bfloat16)
        xb = xf.astype(jnp.bfloat16)

        # Fused Q|K projection; Wq/bq were pre-scaled by 1/sqrt(head_dim).
        qk = jnp.dot(qk_in, wqk, preferred_element_type=jnp.float32) + bqk
        q = qk[:, :dm]
        k = qk[:, dm:]
        v = jnp.dot(xb, wv, preferred_element_type=jnp.float32) + bv

        qh = to_head_batch(q).astype(jnp.bfloat16)
        kh = to_head_batch(k).astype(jnp.bfloat16)
        vh = to_head_batch(v).astype(jnp.bfloat16)

        # One batched score matmul + one softmax for all heads.
        s = jnp.einsum('nqd,nkd->nqk', qh, kh,
                       preferred_element_type=jnp.float32)
        s = s - jnp.max(s, axis=-1, keepdims=True)
        p = jnp.exp(s)
        p = p * pl.reciprocal(jnp.sum(p, axis=-1, keepdims=True), approx=True)
        oh = jnp.einsum('nqk,nkd->nqd', p.astype(jnp.bfloat16), vh,
                        preferred_element_type=jnp.float32)

        # Reassemble heads along lanes -> single full-width output projection.
        oh2 = oh.reshape(nh, rows, hd)
        o = jnp.concatenate([oh2[h] for h in range(nh)], axis=-1)  # (rows, D)
        attn = jnp.dot(o.astype(jnp.bfloat16), wo,
                       preferred_element_type=jnp.float32) + bo

        # --- add & norm (consistent feature) --------------------------------
        src = _layer_norm(xf + attn, g1, be1)
        feat_ref[layer] = src.reshape(bc, seq, dm).astype(feat_ref.dtype)

        # --- feed-forward network + add & norm ------------------------------
        h1 = jnp.maximum(
            jnp.dot(src.astype(jnp.bfloat16), w1,
                    preferred_element_type=jnp.float32) + b1, 0.0)
        ff = jnp.dot(h1.astype(jnp.bfloat16), w2,
                     preferred_element_type=jnp.float32) + b2
        xf = _layer_norm(src + ff, g2, be2)

    out_ref[...] = xf.reshape(bc, seq, dm).astype(out_ref.dtype)


def _fuse_layer_params(lp):
    """Wrapper-side (free) restructuring of one layer's standard 16 params:
    concat Wq|Wk (and bq|bk), fold 1/sqrt(head_dim) into Wq/bq, pre-cast
    matmul weights to bf16 (f32 accumulation stays in-kernel)."""
    (wq, bq, wk, bk, wv, bv, wo, bo, g1, be1,
     w1, b1, w2, b2, g2, be2) = lp
    scale = 1.0 / float(HEAD_DIM) ** 0.5
    wqk = jnp.concatenate([wq * scale, wk], axis=1).astype(jnp.bfloat16)
    bqk = jnp.concatenate([bq * scale, bk], axis=1).astype(jnp.float32)
    return (wqk, bqk,
            wv.astype(jnp.bfloat16), bv.astype(jnp.float32),
            wo.astype(jnp.bfloat16), bo.astype(jnp.float32),
            g1.astype(jnp.float32), be1.astype(jnp.float32),
            w1.astype(jnp.bfloat16), b1.astype(jnp.float32),
            w2.astype(jnp.bfloat16), b2.astype(jnp.float32),
            g2.astype(jnp.float32), be2.astype(jnp.float32))


def transformer_encoder(src, pos, layer_params):
    """Mirrors TransformerEncoder.forward (norm=None): returns (output,
    [consistent_feature per layer]).  Single fused pallas_call."""
    B, S, D = src.shape
    num_layers = len(layer_params)

    # Grid sizing: only split the batch across grid steps when each half would
    # see substantial work (>= 256 rows).  At MAN sizes (16 rows total) one
    # grid step is strictly faster on v5e/v6e (single TC) and on v7x too
    # (per-step overhead swamps any 2-TC sharding win this small).
    rows_per_half = (B // 2) * S if B % 2 == 0 else 0
    n_split = 2 if rows_per_half >= 256 else 1
    BC = B // n_split

    flat_params = [p for lp in layer_params for p in _fuse_layer_params(lp)]

    in_specs = [pl.BlockSpec((BC, S, D), lambda b: (b, 0, 0)),
                pl.BlockSpec((BC, S, D), lambda b: (b, 0, 0))]
    for p in flat_params:
        # Constant block index => weights stay VMEM-resident (one DMA total).
        in_specs.append(pl.BlockSpec(p.shape, lambda b, n=p.ndim: (0,) * n))

    out_specs = [pl.BlockSpec((BC, S, D), lambda b: (b, 0, 0)),
                 pl.BlockSpec((num_layers, BC, S, D), lambda b: (0, b, 0, 0))]
    out_shape = [jax.ShapeDtypeStruct((B, S, D), src.dtype),
                 jax.ShapeDtypeStruct((num_layers, B, S, D), src.dtype)]

    out, feats = pl.pallas_call(
        fused_encoder_kernel,
        grid=(n_split,),
        in_specs=in_specs,
        out_specs=out_specs,
        out_shape=out_shape,
        compiler_params=pltpu.CompilerParams(
            dimension_semantics=(
                ("arbitrary",) if n_split == 1 else ("parallel",))),
    )(src, pos, *flat_params)

    return out, [feats[l] for l in range(num_layers)]


def init_params(key, d_model=D_MODEL, dim_ff=DIM_FF):
    """Deterministic synthetic weights for one encoder layer (standard
    16-tuple; fusion/casting happens in the wrapper).  Biases are shaped
    (1, D) so they map cleanly into VMEM."""
    ks = jax.random.split(key, 12)
    s = 0.02
    wq = jax.random.normal(ks[0], (d_model, d_model), jnp.float32) * s
    wk = jax.random.normal(ks[1], (d_model, d_model), jnp.float32) * s
    wv = jax.random.normal(ks[2], (d_model, d_model), jnp.float32) * s
    wo = jax.random.normal(ks[3], (d_model, d_model), jnp.float32) * s
    bq = jax.random.normal(ks[4], (1, d_model), jnp.float32) * s
    bk = jax.random.normal(ks[5], (1, d_model), jnp.float32) * s
    bv = jax.random.normal(ks[6], (1, d_model), jnp.float32) * s
    bo = jax.random.normal(ks[7], (1, d_model), jnp.float32) * s
    g1 = jnp.ones((1, d_model), jnp.float32)
    be1 = jnp.zeros((1, d_model), jnp.float32)
    w1 = jax.random.normal(ks[8], (d_model, dim_ff), jnp.float32) * s
    b1 = jax.random.normal(ks[9], (1, dim_ff), jnp.float32) * s
    w2 = jax.random.normal(ks[10], (dim_ff, d_model), jnp.float32) * s
    b2 = jax.random.normal(ks[11], (1, d_model), jnp.float32) * s
    g2 = jnp.ones((1, d_model), jnp.float32)
    be2 = jnp.zeros((1, d_model), jnp.float32)
    return (wq, bq, wk, bk, wv, bv, wo, bo, g1, be1,
            w1, b1, w2, b2, g2, be2)


if __name__ == "__main__":
    key = jax.random.PRNGKey(0)
    k_src, k_pos, k_par = jax.random.split(key, 3)

    B, S, D = 2, 8, D_MODEL
    src = jax.random.normal(k_src, (B, S, D), jnp.float32)
    pos = jax.random.normal(k_pos, (B, S, D), jnp.float32)

    # _get_clones deep-copies one layer => identical initial weights per layer
    # (per-layer parameter sets are still supported for trained models).
    layer0 = init_params(k_par)
    layer_params = tuple(layer0 for _ in range(NUM_LAYERS))

    output, features = jax.jit(transformer_encoder)(src, pos, layer_params)

    output = jax.block_until_ready(output)
    for f in features:
        jax.block_until_ready(f)

    assert output.shape == (B, S, D)
    assert len(features) == NUM_LAYERS
    assert all(f.shape == (B, S, D) for f in features)
    print("KERNEL_OK")
</pallas_src>

<mosaic_0001>
module attributes {stable_mosaic.version = 11 : i64} {
  func.func @fused_encoder_kernel(%arg0: i32, %arg1: memref<2x8x32xf32, #tpu.memory_space<vmem>>, %arg2: memref<2x8x32xf32, #tpu.memory_space<vmem>>, %arg3: memref<32x64xbf16, #tpu.memory_space<vmem>>, %arg4: memref<1x64xf32, #tpu.memory_space<vmem>>, %arg5: memref<32x32xbf16, #tpu.memory_space<vmem>>, %arg6: memref<1x32xf32, #tpu.memory_space<vmem>>, %arg7: memref<32x32xbf16, #tpu.memory_space<vmem>>, %arg8: memref<1x32xf32, #tpu.memory_space<vmem>>, %arg9: memref<1x32xf32, #tpu.memory_space<vmem>>, %arg10: memref<1x32xf32, #tpu.memory_space<vmem>>, %arg11: memref<32x64xbf16, #tpu.memory_space<vmem>>, %arg12: memref<1x64xf32, #tpu.memory_space<vmem>>, %arg13: memref<64x32xbf16, #tpu.memory_space<vmem>>, %arg14: memref<1x32xf32, #tpu.memory_space<vmem>>, %arg15: memref<1x32xf32, #tpu.memory_space<vmem>>, %arg16: memref<1x32xf32, #tpu.memory_space<vmem>>, %arg17: memref<32x64xbf16, #tpu.memory_space<vmem>>, %arg18: memref<1x64xf32, #tpu.memory_space<vmem>>, %arg19: memref<32x32xbf16, #tpu.memory_space<vmem>>, %arg20: memref<1x32xf32, #tpu.memory_space<vmem>>, %arg21: memref<32x32xbf16, #tpu.memory_space<vmem>>, %arg22: memref<1x32xf32, #tpu.memory_space<vmem>>, %arg23: memref<1x32xf32, #tpu.memory_space<vmem>>, %arg24: memref<1x32xf32, #tpu.memory_space<vmem>>, %arg25: memref<32x64xbf16, #tpu.memory_space<vmem>>, %arg26: memref<1x64xf32, #tpu.memory_space<vmem>>, %arg27: memref<64x32xbf16, #tpu.memory_space<vmem>>, %arg28: memref<1x32xf32, #tpu.memory_space<vmem>>, %arg29: memref<1x32xf32, #tpu.memory_space<vmem>>, %arg30: memref<1x32xf32, #tpu.memory_space<vmem>>, %arg31: memref<2x8x32xf32, #tpu.memory_space<vmem>>, %arg32: memref<2x2x8x32xf32, #tpu.memory_space<vmem>>) attributes {dimension_semantics = [#tpu.dimension_semantics<arbitrary>], iteration_bounds = array<i64: 1>, scalar_prefetch = 0 : i64, scratch_operands = 0 : i64, tpu.core_type = #tpu.core_type<tc>, window_params = [{transform_indices = @transform_0, window_bounds = array<i64: 2, 8, 32>}, {transform_indices = @transform_1, window_bounds = array<i64: 2, 8, 32>}, {pipeline_mode = #tpu.pipeline_mode<synchronous>, transform_indices = @transform_2, window_bounds = array<i64: 32, 64>}, {pipeline_mode = #tpu.pipeline_mode<synchronous>, transform_indices = @transform_3, window_bounds = array<i64: 1, 64>}, {pipeline_mode = #tpu.pipeline_mode<synchronous>, transform_indices = @transform_4, window_bounds = array<i64: 32, 32>}, {pipeline_mode = #tpu.pipeline_mode<synchronous>, transform_indices = @transform_5, window_bounds = array<i64: 1, 32>}, {pipeline_mode = #tpu.pipeline_mode<synchronous>, transform_indices = @transform_6, window_bounds = array<i64: 32, 32>}, {pipeline_mode = #tpu.pipeline_mode<synchronous>, transform_indices = @transform_7, window_bounds = array<i64: 1, 32>}, {pipeline_mode = #tpu.pipeline_mode<synchronous>, transform_indices = @transform_8, window_bounds = array<i64: 1, 32>}, {pipeline_mode = #tpu.pipeline_mode<synchronous>, transform_indices = @transform_9, window_bounds = array<i64: 1, 32>}, {pipeline_mode = #tpu.pipeline_mode<synchronous>, transform_indices = @transform_10, window_bounds = array<i64: 32, 64>}, {pipeline_mode = #tpu.pipeline_mode<synchronous>, transform_indices = @transform_11, window_bounds = array<i64: 1, 64>}, {pipeline_mode = #tpu.pipeline_mode<synchronous>, transform_indices = @transform_12, window_bounds = array<i64: 64, 32>}, {pipeline_mode = #tpu.pipeline_mode<synchronous>, transform_indices = @transform_13, window_bounds = array<i64: 1, 32>}, {pipeline_mode = #tpu.pipeline_mode<synchronous>, transform_indices = @transform_14, window_bounds = array<i64: 1, 32>}, {pipeline_mode = #tpu.pipeline_mode<synchronous>, transform_indices = @transform_15, window_bounds = array<i64: 1, 32>}, {pipeline_mode = #tpu.pipeline_mode<synchronous>, transform_indices = @transform_16, window_bounds = array<i64: 32, 64>}, {pipeline_mode = #tpu.pipeline_mode<synchronous>, transform_indices = @transform_17, window_bounds = array<i64: 1, 64>}, {pipeline_mode = #tpu.pipeline_mode<synchronous>, transform_indices = @transform_18, window_bounds = array<i64: 32, 32>}, {pipeline_mode = #tpu.pipeline_mode<synchronous>, transform_indices = @transform_19, window_bounds = array<i64: 1, 32>}, {pipeline_mode = #tpu.pipeline_mode<synchronous>, transform_indices = @transform_20, window_bounds = array<i64: 32, 32>}, {pipeline_mode = #tpu.pipeline_mode<synchronous>, transform_indices = @transform_21, window_bounds = array<i64: 1, 32>}, {pipeline_mode = #tpu.pipeline_mode<synchronous>, transform_indices = @transform_22, window_bounds = array<i64: 1, 32>}, {pipeline_mode = #tpu.pipeline_mode<synchronous>, transform_indices = @transform_23, window_bounds = array<i64: 1, 32>}, {pipeline_mode = #tpu.pipeline_mode<synchronous>, transform_indices = @transform_24, window_bounds = array<i64: 32, 64>}, {pipeline_mode = #tpu.pipeline_mode<synchronous>, transform_indices = @transform_25, window_bounds = array<i64: 1, 64>}, {pipeline_mode = #tpu.pipeline_mode<synchronous>, transform_indices = @transform_26, window_bounds = array<i64: 64, 32>}, {pipeline_mode = #tpu.pipeline_mode<synchronous>, transform_indices = @transform_27, window_bounds = array<i64: 1, 32>}, {pipeline_mode = #tpu.pipeline_mode<synchronous>, transform_indices = @transform_28, window_bounds = array<i64: 1, 32>}, {pipeline_mode = #tpu.pipeline_mode<synchronous>, transform_indices = @transform_29, window_bounds = array<i64: 1, 32>}, {transform_indices = @transform_30, window_bounds = array<i64: 2, 8, 32>}, {transform_indices = @transform_31, window_bounds = array<i64: 2, 2, 8, 32>}]} {
    %c0 = arith.constant 0 : index
    %c0_0 = arith.constant 0 : index
    %c0_1 = arith.constant 0 : index
    %0 = vector.load %arg1[%c0, %c0_0, %c0_1] : memref<2x8x32xf32, #tpu.memory_space<vmem>>, vector<2x8x32xf32>
    %1 = vector.shape_cast %0 : vector<2x8x32xf32> to vector<16x32xf32>
    %c0_2 = arith.constant 0 : index
    %c0_3 = arith.constant 0 : index
    %c0_4 = arith.constant 0 : index
    %2 = vector.load %arg2[%c0_2, %c0_3, %c0_4] : memref<2x8x32xf32, #tpu.memory_space<vmem>>, vector<2x8x32xf32>
    %3 = vector.shape_cast %2 : vector<2x8x32xf32> to vector<16x32xf32>
    %c0_5 = arith.constant 0 : index
    %c0_6 = arith.constant 0 : index
    %4 = vector.load %arg3[%c0_5, %c0_6] : memref<32x64xbf16, #tpu.memory_space<vmem>>, vector<32x64xbf16>
    %c0_7 = arith.constant 0 : index
    %c0_8 = arith.constant 0 : index
    %5 = vector.load %arg4[%c0_7, %c0_8] : memref<1x64xf32, #tpu.memory_space<vmem>>, vector<1x64xf32>
    %c0_9 = arith.constant 0 : index
    %c0_10 = arith.constant 0 : index
    %6 = vector.load %arg5[%c0_9, %c0_10] : memref<32x32xbf16, #tpu.memory_space<vmem>>, vector<32x32xbf16>
    %c0_11 = arith.constant 0 : index
    %c0_12 = arith.constant 0 : index
    %7 = vector.load %arg6[%c0_11, %c0_12] : memref<1x32xf32, #tpu.memory_space<vmem>>, vector<1x32xf32>
    %c0_13 = arith.constant 0 : index
    %c0_14 = arith.constant 0 : index
    %8 = vector.load %arg7[%c0_13, %c0_14] : memref<32x32xbf16, #tpu.memory_space<vmem>>, vector<32x32xbf16>
    %c0_15 = arith.constant 0 : index
    %c0_16 = arith.constant 0 : index
    %9 = vector.load %arg8[%c0_15, %c0_16] : memref<1x32xf32, #tpu.memory_space<vmem>>, vector<1x32xf32>
    %c0_17 = arith.constant 0 : index
    %c0_18 = arith.constant 0 : index
    %10 = vector.load %arg9[%c0_17, %c0_18] : memref<1x32xf32, #tpu.memory_space<vmem>>, vector<1x32xf32>
    %c0_19 = arith.constant 0 : index
    %c0_20 = arith.constant 0 : index
    %11 = vector.load %arg10[%c0_19, %c0_20] : memref<1x32xf32, #tpu.memory_space<vmem>>, vector<1x32xf32>
    %c0_21 = arith.constant 0 : index
    %c0_22 = arith.constant 0 : index
    %12 = vector.load %arg11[%c0_21, %c0_22] : memref<32x64xbf16, #tpu.memory_space<vmem>>, vector<32x64xbf16>
    %c0_23 = arith.constant 0 : index
    %c0_24 = arith.constant 0 : index
    %13 = vector.load %arg12[%c0_23, %c0_24] : memref<1x64xf32, #tpu.memory_space<vmem>>, vector<1x64xf32>
    %c0_25 = arith.constant 0 : index
    %c0_26 = arith.constant 0 : index
    %14 = vector.load %arg13[%c0_25, %c0_26] : memref<64x32xbf16, #tpu.memory_space<vmem>>, vector<64x32xbf16>
    %c0_27 = arith.constant 0 : index
    %c0_28 = arith.constant 0 : index
    %15 = vector.load %arg14[%c0_27, %c0_28] : memref<1x32xf32, #tpu.memory_space<vmem>>, vector<1x32xf32>
    %c0_29 = arith.constant 0 : index
    %c0_30 = arith.constant 0 : index
    %16 = vector.load %arg15[%c0_29, %c0_30] : memref<1x32xf32, #tpu.memory_space<vmem>>, vector<1x32xf32>
    %c0_31 = arith.constant 0 : index
    %c0_32 = arith.constant 0 : index
    %17 = vector.load %arg16[%c0_31, %c0_32] : memref<1x32xf32, #tpu.memory_space<vmem>>, vector<1x32xf32>
    %18 = arith.addf %1, %3 : vector<16x32xf32>
    %19 = arith.truncf %18 : vector<16x32xf32> to vector<16x32xbf16>
    %20 = arith.truncf %1 : vector<16x32xf32> to vector<16x32xbf16>
    %cst = arith.constant dense<0.000000e+00> : vector<16x64xf32>
    %21 = tpu.matmul %19, %4, %cst {dimension_numbers = #tpu.dot_dimension_numbers<[1], [0], [0], [1], [0, 0, 1, 1], [], []>} : vector<16x32xbf16>, vector<32x64xbf16>, vector<16x64xf32> -> vector<16x64xf32>
    %22 = vector.broadcast %5 : vector<1x64xf32> to vector<16x64xf32>
    %23 = arith.addf %21, %22 : vector<16x64xf32>
    %24 = vector.extract_strided_slice %23 {offsets = [0, 0], sizes = [16, 32], strides = [1, 1]} : vector<16x64xf32> to vector<16x32xf32>
    %25 = vector.extract_strided_slice %23 {offsets = [0, 32], sizes = [16, 32], strides = [1, 1]} : vector<16x64xf32> to vector<16x32xf32>
    %cst_33 = arith.constant dense<0.000000e+00> : vector<16x32xf32>
    %26 = tpu.matmul %20, %6, %cst_33 {dimension_numbers = #tpu.dot_dimension_numbers<[1], [0], [0], [1], [0, 0, 1, 1], [], []>} : vector<16x32xbf16>, vector<32x32xbf16>, vector<16x32xf32> -> vector<16x32xf32>
    %27 = vector.broadcast %7 : vector<1x32xf32> to vector<16x32xf32>
    %28 = arith.addf %26, %27 : vector<16x32xf32>
    %29 = vector.extract_strided_slice %24 {offsets = [0, 0], sizes = [16, 8], strides = [1, 1]} : vector<16x32xf32> to vector<16x8xf32>
    %30 = vector.shape_cast %29 : vector<16x8xf32> to vector<2x8x8xf32>
    %31 = vector.extract_strided_slice %24 {offsets = [0, 8], sizes = [16, 8], strides = [1, 1]} : vector<16x32xf32> to vector<16x8xf32>
    %32 = vector.shape_cast %31 : vector<16x8xf32> to vector<2x8x8xf32>
    %33 = vector.extract_strided_slice %24 {offsets = [0, 16], sizes = [16, 8], strides = [1, 1]} : vector<16x32xf32> to vector<16x8xf32>
    %34 = vector.shape_cast %33 : vector<16x8xf32> to vector<2x8x8xf32>
    %35 = vector.extract_strided_slice %24 {offsets = [0, 24], sizes = [16, 8], strides = [1, 1]} : vector<16x32xf32> to vector<16x8xf32>
    %36 = vector.shape_cast %35 : vector<16x8xf32> to vector<2x8x8xf32>
    %37 = vector.shape_cast %30 : vector<2x8x8xf32> to vector<1x2x8x8xf32>
    %38 = vector.shape_cast %32 : vector<2x8x8xf32> to vector<1x2x8x8xf32>
    %39 = vector.shape_cast %34 : vector<2x8x8xf32> to vector<1x2x8x8xf32>
    %40 = vector.shape_cast %36 : vector<2x8x8xf32> to vector<1x2x8x8xf32>
    %41 = tpu.concatenate %37, %38, %39, %40 in 0 : vector<1x2x8x8xf32>, vector<1x2x8x8xf32>, vector<1x2x8x8xf32>, vector<1x2x8x8xf32> -> vector<4x2x8x8xf32>
    %42 = vector.shape_cast %41 : vector<4x2x8x8xf32> to vector<8x8x8xf32>
    %43 = arith.truncf %42 : vector<8x8x8xf32> to vector<8x8x8xbf16>
    %44 = vector.extract_strided_slice %25 {offsets = [0, 0], sizes = [16, 8], strides = [1, 1]} : vector<16x32xf32> to vector<16x8xf32>
    %45 = vector.shape_cast %44 : vector<16x8xf32> to vector<2x8x8xf32>
    %46 = vector.extract_strided_slice %25 {offsets = [0, 8], sizes = [16, 8], strides = [1, 1]} : vector<16x32xf32> to vector<16x8xf32>
    %47 = vector.shape_cast %46 : vector<16x8xf32> to vector<2x8x8xf32>
    %48 = vector.extract_strided_slice %25 {offsets = [0, 16], sizes = [16, 8], strides = [1, 1]} : vector<16x32xf32> to vector<16x8xf32>
    %49 = vector.shape_cast %48 : vector<16x8xf32> to vector<2x8x8xf32>
    %50 = vector.extract_strided_slice %25 {offsets = [0, 24], sizes = [16, 8], strides = [1, 1]} : vector<16x32xf32> to vector<16x8xf32>
    %51 = vector.shape_cast %50 : vector<16x8xf32> to vector<2x8x8xf32>
    %52 = vector.shape_cast %45 : vector<2x8x8xf32> to vector<1x2x8x8xf32>
    %53 = vector.shape_cast %47 : vector<2x8x8xf32> to vector<1x2x8x8xf32>
    %54 = vector.shape_cast %49 : vector<2x8x8xf32> to vector<1x2x8x8xf32>
    %55 = vector.shape_cast %51 : vector<2x8x8xf32> to vector<1x2x8x8xf32>
    %56 = tpu.concatenate %52, %53, %54, %55 in 0 : vector<1x2x8x8xf32>, vector<1x2x8x8xf32>, vector<1x2x8x8xf32>, vector<1x2x8x8xf32> -> vector<4x2x8x8xf32>
    %57 = vector.shape_cast %56 : vector<4x2x8x8xf32> to vector<8x8x8xf32>
    %58 = arith.truncf %57 : vector<8x8x8xf32> to vector<8x8x8xbf16>
    %59 = vector.extract_strided_slice %28 {offsets = [0, 0], sizes = [16, 8], strides = [1, 1]} : vector<16x32xf32> to vector<16x8xf32>
    %60 = vector.shape_cast %59 : vector<16x8xf32> to vector<2x8x8xf32>
    %61 = vector.extract_strided_slice %28 {offsets = [0, 8], sizes = [16, 8], strides = [1, 1]} : vector<16x32xf32> to vector<16x8xf32>
    %62 = vector.shape_cast %61 : vector<16x8xf32> to vector<2x8x8xf32>
    %63 = vector.extract_strided_slice %28 {offsets = [0, 16], sizes = [16, 8], strides = [1, 1]} : vector<16x32xf32> to vector<16x8xf32>
    %64 = vector.shape_cast %63 : vector<16x8xf32> to vector<2x8x8xf32>
    %65 = vector.extract_strided_slice %28 {offsets = [0, 24], sizes = [16, 8], strides = [1, 1]} : vector<16x32xf32> to vector<16x8xf32>
    %66 = vector.shape_cast %65 : vector<16x8xf32> to vector<2x8x8xf32>
    %67 = vector.shape_cast %60 : vector<2x8x8xf32> to vector<1x2x8x8xf32>
    %68 = vector.shape_cast %62 : vector<2x8x8xf32> to vector<1x2x8x8xf32>
    %69 = vector.shape_cast %64 : vector<2x8x8xf32> to vector<1x2x8x8xf32>
    %70 = vector.shape_cast %66 : vector<2x8x8xf32> to vector<1x2x8x8xf32>
    %71 = tpu.concatenate %67, %68, %69, %70 in 0 : vector<1x2x8x8xf32>, vector<1x2x8x8xf32>, vector<1x2x8x8xf32>, vector<1x2x8x8xf32> -> vector<4x2x8x8xf32>
    %72 = vector.shape_cast %71 : vector<4x2x8x8xf32> to vector<8x8x8xf32>
    %73 = arith.truncf %72 : vector<8x8x8xf32> to vector<8x8x8xbf16>
    "tpu.trace_start"() <{level = 10 : i32, message = "nqd,nkd->nqk"}> : () -> ()
    %cst_34 = arith.constant dense<0.000000e+00> : vector<8x8x8xf32>
    %74 = tpu.matmul %43, %58, %cst_34 {dimension_numbers = #tpu.dot_dimension_numbers<[2], [2], [1], [1], [0, 0, 0, 1, 1, 1], [0], [0]>} : vector<8x8x8xbf16>, vector<8x8x8xbf16>, vector<8x8x8xf32> -> vector<8x8x8xf32>
    "tpu.trace_stop"() : () -> ()
    %cst_35 = arith.constant dense<0xFF800000> : vector<8x8xf32>
    %75 = vector.multi_reduction <maximumf>, %74, %cst_35 [2] : vector<8x8x8xf32> to vector<8x8xf32>
    %76 = vector.shape_cast %75 : vector<8x8xf32> to vector<8x8x1xf32>
    %77 = vector.broadcast %76 : vector<8x8x1xf32> to vector<8x8x8xf32>
    %78 = arith.subf %74, %77 : vector<8x8x8xf32>
    %79 = math.exp %78 : vector<8x8x8xf32>
    %cst_36 = arith.constant dense<0.000000e+00> : vector<8x8xf32>
    %80 = vector.multi_reduction <add>, %79, %cst_36 [2] : vector<8x8x8xf32> to vector<8x8xf32>
    %81 = vector.shape_cast %80 : vector<8x8xf32> to vector<8x8x1xf32>
    %82 = tpu.reciprocal %81 {approx = true} : vector<8x8x1xf32> -> vector<8x8x1xf32>
    %83 = vector.broadcast %82 : vector<8x8x1xf32> to vector<8x8x8xf32>
    %84 = arith.mulf %79, %83 : vector<8x8x8xf32>
    %85 = arith.truncf %84 : vector<8x8x8xf32> to vector<8x8x8xbf16>
    "tpu.trace_start"() <{level = 10 : i32, message = "nqk,nkd->nqd"}> : () -> ()
    %cst_37 = arith.constant dense<0.000000e+00> : vector<8x8x8xf32>
    %86 = tpu.matmul %85, %73, %cst_37 {dimension_numbers = #tpu.dot_dimension_numbers<[2], [1], [1], [2], [0, 0, 0, 1, 1, 2], [0], [0]>} : vector<8x8x8xbf16>, vector<8x8x8xbf16>, vector<8x8x8xf32> -> vector<8x8x8xf32>
    "tpu.trace_stop"() : () -> ()
    %87 = vector.shape_cast %86 : vector<8x8x8xf32> to vector<4x16x8xf32>
    %88 = vector.extract_strided_slice %87 {offsets = [0, 0, 0], sizes = [1, 16, 8], strides = [1, 1, 1]} : vector<4x16x8xf32> to vector<1x16x8xf32>
    %89 = vector.shape_cast %88 : vector<1x16x8xf32> to vector<16x8xf32>
    %90 = vector.extract_strided_slice %87 {offsets = [1, 0, 0], sizes = [1, 16, 8], strides = [1, 1, 1]} : vector<4x16x8xf32> to vector<1x16x8xf32>
    %91 = vector.shape_cast %90 : vector<1x16x8xf32> to vector<16x8xf32>
    %92 = vector.extract_strided_slice %87 {offsets = [2, 0, 0], sizes = [1, 16, 8], strides = [1, 1, 1]} : vector<4x16x8xf32> to vector<1x16x8xf32>
    %93 = vector.shape_cast %92 : vector<1x16x8xf32> to vector<16x8xf32>
    %94 = vector.extract_strided_slice %87 {offsets = [3, 0, 0], sizes = [1, 16, 8], strides = [1, 1, 1]} : vector<4x16x8xf32> to vector<1x16x8xf32>
    %95 = vector.shape_cast %94 : vector<1x16x8xf32> to vector<16x8xf32>
    %96 = tpu.concatenate %89, %91, %93, %95 in 1 : vector<16x8xf32>, vector<16x8xf32>, vector<16x8xf32>, vector<16x8xf32> -> vector<16x32xf32>
    %97 = arith.truncf %96 : vector<16x32xf32> to vector<16x32xbf16>
    %cst_38 = arith.constant dense<0.000000e+00> : vector<16x32xf32>
    %98 = tpu.matmul %97, %8, %cst_38 {dimension_numbers = #tpu.dot_dimension_numbers<[1], [0], [0], [1], [0, 0, 1, 1], [], []>} : vector<16x32xbf16>, vector<32x32xbf16>, vector<16x32xf32> -> vector<16x32xf32>
    %99 = vector.broadcast %9 : vector<1x32xf32> to vector<16x32xf32>
    %100 = arith.addf %98, %99 : vector<16x32xf32>
    %101 = arith.addf %1, %100 : vector<16x32xf32>
    %cst_39 = arith.constant dense<0.000000e+00> : vector<16xf32>
    %102 = vector.multi_reduction <add>, %101, %cst_39 [1] : vector<16x32xf32> to vector<16xf32>
    %103 = vector.shape_cast %102 : vector<16xf32> to vector<16x1xf32>
    %cst_40 = arith.constant 3.200000e+01 : f32
    %104 = vector.broadcast %cst_40 : f32 to vector<16x1xf32>
    %105 = arith.divf %103, %104 : vector<16x1xf32>
    %106 = vector.broadcast %105 : vector<16x1xf32> to vector<16x32xf32>
    %107 = arith.subf %101, %106 : vector<16x32xf32>
    %108 = arith.mulf %107, %107 : vector<16x32xf32>
    %cst_41 = arith.constant dense<0.000000e+00> : vector<16xf32>
    %109 = vector.multi_reduction <add>, %108, %cst_41 [1] : vector<16x32xf32> to vector<16xf32>
    %110 = vector.shape_cast %109 : vector<16xf32> to vector<16x1xf32>
    %cst_42 = arith.constant 3.200000e+01 : f32
    %111 = vector.broadcast %cst_42 : f32 to vector<16x1xf32>
    %112 = arith.divf %110, %111 : vector<16x1xf32>
    %113 = vector.broadcast %105 : vector<16x1xf32> to vector<16x32xf32>
    %114 = arith.subf %101, %113 : vector<16x32xf32>
    %cst_43 = arith.constant 9.99999974E-6 : f32
    %115 = vector.broadcast %cst_43 : f32 to vector<16x1xf32>
    %116 = arith.addf %112, %115 : vector<16x1xf32>
    %117 = math.rsqrt %116 : vector<16x1xf32>
    %118 = vector.broadcast %117 : vector<16x1xf32> to vector<16x32xf32>
    %119 = arith.mulf %114, %118 : vector<16x32xf32>
    %120 = vector.broadcast %10 : vector<1x32xf32> to vector<16x32xf32>
    %121 = arith.mulf %119, %120 : vector<16x32xf32>
    %122 = vector.broadcast %11 : vector<1x32xf32> to vector<16x32xf32>
    %123 = arith.addf %121, %122 : vector<16x32xf32>
    %124 = vector.shape_cast %123 : vector<16x32xf32> to vector<2x8x32xf32>
    %c0_44 = arith.constant 0 : index
    %c0_45 = arith.constant 0 : index
    %c0_46 = arith.constant 0 : index
    %c0_47 = arith.constant 0 : index
    %125 = vector.load %arg32[%c0_44, %c0_45, %c0_46, %c0_47] : memref<2x2x8x32xf32, #tpu.memory_space<vmem>>, vector<1x2x8x32xf32>
    %126 = vector.shape_cast %125 : vector<1x2x8x32xf32> to vector<2x8x32xf32>
    %127 = vector.shape_cast %124 : vector<2x8x32xf32> to vector<1x2x8x32xf32>
    tpu.vector_store %arg32[%c0_44, %c0_45, %c0_46, %c0_47], %127 {strides = array<i32>} : memref<2x2x8x32xf32, #tpu.memory_space<vmem>>, vector<1x2x8x32xf32>,
    %128 = arith.truncf %123 : vector<16x32xf32> to vector<16x32xbf16>
    %cst_48 = arith.constant dense<0.000000e+00> : vector<16x64xf32>
    %129 = tpu.matmul %128, %12, %cst_48 {dimension_numbers = #tpu.dot_dimension_numbers<[1], [0], [0], [1], [0, 0, 1, 1], [], []>} : vector<16x32xbf16>, vector<32x64xbf16>, vector<16x64xf32> -> vector<16x64xf32>
    %130 = vector.broadcast %13 : vector<1x64xf32> to vector<16x64xf32>
    %131 = arith.addf %129, %130 : vector<16x64xf32>
    %cst_49 = arith.constant 0.000000e+00 : f32
    %132 = vector.broadcast %cst_49 : f32 to vector<16x64xf32>
    %133 = arith.maximumf %131, %132 : vector<16x64xf32>
    %134 = arith.truncf %133 : vector<16x64xf32> to vector<16x64xbf16>
    %cst_50 = arith.constant dense<0.000000e+00> : vector<16x32xf32>
    %135 = tpu.matmul %134, %14, %cst_50 {dimension_numbers = #tpu.dot_dimension_numbers<[1], [0], [0], [1], [0, 0, 1, 1], [], []>} : vector<16x64xbf16>, vector<64x32xbf16>, vector<16x32xf32> -> vector<16x32xf32>
    %136 = vector.broadcast %15 : vector<1x32xf32> to vector<16x32xf32>
    %137 = arith.addf %135, %136 : vector<16x32xf32>
    %138 = arith.addf %123, %137 : vector<16x32xf32>
    %cst_51 = arith.constant dense<0.000000e+00> : vector<16xf32>
    %139 = vector.multi_reduction <add>, %138, %cst_51 [1] : vector<16x32xf32> to vector<16xf32>
    %140 = vector.shape_cast %139 : vector<16xf32> to vector<16x1xf32>
    %cst_52 = arith.constant 3.200000e+01 : f32
    %141 = vector.broadcast %cst_52 : f32 to vector<16x1xf32>
    %142 = arith.divf %140, %141 : vector<16x1xf32>
    %143 = vector.broadcast %142 : vector<16x1xf32> to vector<16x32xf32>
    %144 = arith.subf %138, %143 : vector<16x32xf32>
    %145 = arith.mulf %144, %144 : vector<16x32xf32>
    %cst_53 = arith.constant dense<0.000000e+00> : vector<16xf32>
    %146 = vector.multi_reduction <add>, %145, %cst_53 [1] : vector<16x32xf32> to vector<16xf32>
    %147 = vector.shape_cast %146 : vector<16xf32> to vector<16x1xf32>
    %cst_54 = arith.constant 3.200000e+01 : f32
    %148 = vector.broadcast %cst_54 : f32 to vector<16x1xf32>
    %149 = arith.divf %147, %148 : vector<16x1xf32>
    %150 = vector.broadcast %142 : vector<16x1xf32> to vector<16x32xf32>
    %151 = arith.subf %138, %150 : vector<16x32xf32>
    %cst_55 = arith.constant 9.99999974E-6 : f32
    %152 = vector.broadcast %cst_55 : f32 to vector<16x1xf32>
    %153 = arith.addf %149, %152 : vector<16x1xf32>
    %154 = math.rsqrt %153 : vector<16x1xf32>
    %155 = vector.broadcast %154 : vector<16x1xf32> to vector<16x32xf32>
    %156 = arith.mulf %151, %155 : vector<16x32xf32>
    %157 = vector.broadcast %16 : vector<1x32xf32> to vector<16x32xf32>
    %158 = arith.mulf %156, %157 : vector<16x32xf32>
    %159 = vector.broadcast %17 : vector<1x32xf32> to vector<16x32xf32>
    %160 = arith.addf %158, %159 : vector<16x32xf32>
    %c0_56 = arith.constant 0 : index
    %c0_57 = arith.constant 0 : index
    %161 = vector.load %arg17[%c0_56, %c0_57] : memref<32x64xbf16, #tpu.memory_space<vmem>>, vector<32x64xbf16>
    %c0_58 = arith.constant 0 : index
    %c0_59 = arith.constant 0 : index
    %162 = vector.load %arg18[%c0_58, %c0_59] : memref<1x64xf32, #tpu.memory_space<vmem>>, vector<1x64xf32>
    %c0_60 = arith.constant 0 : index
    %c0_61 = arith.constant 0 : index
    %163 = vector.load %arg19[%c0_60, %c0_61] : memref<32x32xbf16, #tpu.memory_space<vmem>>, vector<32x32xbf16>
    %c0_62 = arith.constant 0 : index
    %c0_63 = arith.constant 0 : index
    %164 = vector.load %arg20[%c0_62, %c0_63] : memref<1x32xf32, #tpu.memory_space<vmem>>, vector<1x32xf32>
    %c0_64 = arith.constant 0 : index
    %c0_65 = arith.constant 0 : index
    %165 = vector.load %arg21[%c0_64, %c0_65] : memref<32x32xbf16, #tpu.memory_space<vmem>>, vector<32x32xbf16>
    %c0_66 = arith.constant 0 : index
    %c0_67 = arith.constant 0 : index
    %166 = vector.load %arg22[%c0_66, %c0_67] : memref<1x32xf32, #tpu.memory_space<vmem>>, vector<1x32xf32>
    %c0_68 = arith.constant 0 : index
    %c0_69 = arith.constant 0 : index
    %167 = vector.load %arg23[%c0_68, %c0_69] : memref<1x32xf32, #tpu.memory_space<vmem>>, vector<1x32xf32>
    %c0_70 = arith.constant 0 : index
    %c0_71 = arith.constant 0 : index
    %168 = vector.load %arg24[%c0_70, %c0_71] : memref<1x32xf32, #tpu.memory_space<vmem>>, vector<1x32xf32>
    %c0_72 = arith.constant 0 : index
    %c0_73 = arith.constant 0 : index
    %169 = vector.load %arg25[%c0_72, %c0_73] : memref<32x64xbf16, #tpu.memory_space<vmem>>, vector<32x64xbf16>
    %c0_74 = arith.constant 0 : index
    %c0_75 = arith.constant 0 : index
    %170 = vector.load %arg26[%c0_74, %c0_75] : memref<1x64xf32, #tpu.memory_space<vmem>>, vector<1x64xf32>
    %c0_76 = arith.constant 0 : index
    %c0_77 = arith.constant 0 : index
    %171 = vector.load %arg27[%c0_76, %c0_77] : memref<64x32xbf16, #tpu.memory_space<vmem>>, vector<64x32xbf16>
    %c0_78 = arith.constant 0 : index
    %c0_79 = arith.constant 0 : index
    %172 = vector.load %arg28[%c0_78, %c0_79] : memref<1x32xf32, #tpu.memory_space<vmem>>, vector<1x32xf32>
    %c0_80 = arith.constant 0 : index
    %c0_81 = arith.constant 0 : index
    %173 = vector.load %arg29[%c0_80, %c0_81] : memref<1x32xf32, #tpu.memory_space<vmem>>, vector<1x32xf32>
    %c0_82 = arith.constant 0 : index
    %c0_83 = arith.constant 0 : index
    %174 = vector.load %arg30[%c0_82, %c0_83] : memref<1x32xf32, #tpu.memory_space<vmem>>, vector<1x32xf32>
    %175 = arith.addf %160, %3 : vector<16x32xf32>
    %176 = arith.truncf %175 : vector<16x32xf32> to vector<16x32xbf16>
    %177 = arith.truncf %160 : vector<16x32xf32> to vector<16x32xbf16>
    %cst_84 = arith.constant dense<0.000000e+00> : vector<16x64xf32>
    %178 = tpu.matmul %176, %161, %cst_84 {dimension_numbers = #tpu.dot_dimension_numbers<[1], [0], [0], [1], [0, 0, 1, 1], [], []>} : vector<16x32xbf16>, vector<32x64xbf16>, vector<16x64xf32> -> vector<16x64xf32>
    %179 = vector.broadcast %162 : vector<1x64xf32> to vector<16x64xf32>
    %180 = arith.addf %178, %179 : vector<16x64xf32>
    %181 = vector.extract_strided_slice %180 {offsets = [0, 0], sizes = [16, 32], strides = [1, 1]} : vector<16x64xf32> to vector<16x32xf32>
    %182 = vector.extract_strided_slice %180 {offsets = [0, 32], sizes = [16, 32], strides = [1, 1]} : vector<16x64xf32> to vector<16x32xf32>
    %cst_85 = arith.constant dense<0.000000e+00> : vector<16x32xf32>
    %183 = tpu.matmul %177, %163, %cst_85 {dimension_numbers = #tpu.dot_dimension_numbers<[1], [0], [0], [1], [0, 0, 1, 1], [], []>} : vector<16x32xbf16>, vector<32x32xbf16>, vector<16x32xf32> -> vector<16x32xf32>
    %184 = vector.broadcast %164 : vector<1x32xf32> to vector<16x32xf32>
    %185 = arith.addf %183, %184 : vector<16x32xf32>
    %186 = vector.extract_strided_slice %181 {offsets = [0, 0], sizes = [16, 8], strides = [1, 1]} : vector<16x32xf32> to vector<16x8xf32>
    %187 = vector.shape_cast %186 : vector<16x8xf32> to vector<2x8x8xf32>
    %188 = vector.extract_strided_slice %181 {offsets = [0, 8], sizes = [16, 8], strides = [1, 1]} : vector<16x32xf32> to vector<16x8xf32>
    %189 = vector.shape_cast %188 : vector<16x8xf32> to vector<2x8x8xf32>
    %190 = vector.extract_strided_slice %181 {offsets = [0, 16], sizes = [16, 8], strides = [1, 1]} : vector<16x32xf32> to vector<16x8xf32>
    %191 = vector.shape_cast %190 : vector<16x8xf32> to vector<2x8x8xf32>
    %192 = vector.extract_strided_slice %181 {offsets = [0, 24], sizes = [16, 8], strides = [1, 1]} : vector<16x32xf32> to vector<16x8xf32>
    %193 = vector.shape_cast %192 : vector<16x8xf32> to vector<2x8x8xf32>
    %194 = vector.shape_cast %187 : vector<2x8x8xf32> to vector<1x2x8x8xf32>
    %195 = vector.shape_cast %189 : vector<2x8x8xf32> to vector<1x2x8x8xf32>
    %196 = vector.shape_cast %191 : vector<2x8x8xf32> to vector<1x2x8x8xf32>
    %197 = vector.shape_cast %193 : vector<2x8x8xf32> to vector<1x2x8x8xf32>
    %198 = tpu.concatenate %194, %195, %196, %197 in 0 : vector<1x2x8x8xf32>, vector<1x2x8x8xf32>, vector<1x2x8x8xf32>, vector<1x2x8x8xf32> -> vector<4x2x8x8xf32>
    %199 = vector.shape_cast %198 : vector<4x2x8x8xf32> to vector<8x8x8xf32>
    %200 = arith.truncf %199 : vector<8x8x8xf32> to vector<8x8x8xbf16>
    %201 = vector.extract_strided_slice %182 {offsets = [0, 0], sizes = [16, 8], strides = [1, 1]} : vector<16x32xf32> to vector<16x8xf32>
    %202 = vector.shape_cast %201 : vector<16x8xf32> to vector<2x8x8xf32>
    %203 = vector.extract_strided_slice %182 {offsets = [0, 8], sizes = [16, 8], strides = [1, 1]} : vector<16x32xf32> to vector<16x8xf32>
    %204 = vector.shape_cast %203 : vector<16x8xf32> to vector<2x8x8xf32>
    %205 = vector.extract_strided_slice %182 {offsets = [0, 16], sizes = [16, 8], strides = [1, 1]} : vector<16x32xf32> to vector<16x8xf32>
    %206 = vector.shape_cast %205 : vector<16x8xf32> to vector<2x8x8xf32>
    %207 = vector.extract_strided_slice %182 {offsets = [0, 24], sizes = [16, 8], strides = [1, 1]} : vector<16x32xf32> to vector<16x8xf32>
    %208 = vector.shape_cast %207 : vector<16x8xf32> to vector<2x8x8xf32>
    %209 = vector.shape_cast %202 : vector<2x8x8xf32> to vector<1x2x8x8xf32>
    %210 = vector.shape_cast %204 : vector<2x8x8xf32> to vector<1x2x8x8xf32>
    %211 = vector.shape_cast %206 : vector<2x8x8xf32> to vector<1x2x8x8xf32>
    %212 = vector.shape_cast %208 : vector<2x8x8xf32> to vector<1x2x8x8xf32>
    %213 = tpu.concatenate %209, %210, %211, %212 in 0 : vector<1x2x8x8xf32>, vector<1x2x8x8xf32>, vector<1x2x8x8xf32>, vector<1x2x8x8xf32> -> vector<4x2x8x8xf32>
    %214 = vector.shape_cast %213 : vector<4x2x8x8xf32> to vector<8x8x8xf32>
    %215 = arith.truncf %214 : vector<8x8x8xf32> to vector<8x8x8xbf16>
    %216 = vector.extract_strided_slice %185 {offsets = [0, 0], sizes = [16, 8], strides = [1, 1]} : vector<16x32xf32> to vector<16x8xf32>
    %217 = vector.shape_cast %216 : vector<16x8xf32> to vector<2x8x8xf32>
    %218 = vector.extract_strided_slice %185 {offsets = [0, 8], sizes = [16, 8], strides = [1, 1]} : vector<16x32xf32> to vector<16x8xf32>
    %219 = vector.shape_cast %218 : vector<16x8xf32> to vector<2x8x8xf32>
    %220 = vector.extract_strided_slice %185 {offsets = [0, 16], sizes = [16, 8], strides = [1, 1]} : vector<16x32xf32> to vector<16x8xf32>
    %221 = vector.shape_cast %220 : vector<16x8xf32> to vector<2x8x8xf32>
    %222 = vector.extract_strided_slice %185 {offsets = [0, 24], sizes = [16, 8], strides = [1, 1]} : vector<16x32xf32> to vector<16x8xf32>
    %223 = vector.shape_cast %222 : vector<16x8xf32> to vector<2x8x8xf32>
    %224 = vector.shape_cast %217 : vector<2x8x8xf32> to vector<1x2x8x8xf32>
    %225 = vector.shape_cast %219 : vector<2x8x8xf32> to vector<1x2x8x8xf32>
    %226 = vector.shape_cast %221 : vector<2x8x8xf32> to vector<1x2x8x8xf32>
    %227 = vector.shape_cast %223 : vector<2x8x8xf32> to vector<1x2x8x8xf32>
    %228 = tpu.concatenate %224, %225, %226, %227 in 0 : vector<1x2x8x8xf32>, vector<1x2x8x8xf32>, vector<1x2x8x8xf32>, vector<1x2x8x8xf32> -> vector<4x2x8x8xf32>
    %229 = vector.shape_cast %228 : vector<4x2x8x8xf32> to vector<8x8x8xf32>
    %230 = arith.truncf %229 : vector<8x8x8xf32> to vector<8x8x8xbf16>
    "tpu.trace_start"() <{level = 10 : i32, message = "nqd,nkd->nqk"}> : () -> ()
    %cst_86 = arith.constant dense<0.000000e+00> : vector<8x8x8xf32>
    %231 = tpu.matmul %200, %215, %cst_86 {dimension_numbers = #tpu.dot_dimension_numbers<[2], [2], [1], [1], [0, 0, 0, 1, 1, 1], [0], [0]>} : vector<8x8x8xbf16>, vector<8x8x8xbf16>, vector<8x8x8xf32> -> vector<8x8x8xf32>
    "tpu.trace_stop"() : () -> ()
    %cst_87 = arith.constant dense<0xFF800000> : vector<8x8xf32>
    %232 = vector.multi_reduction <maximumf>, %231, %cst_87 [2] : vector<8x8x8xf32> to vector<8x8xf32>
    %233 = vector.shape_cast %232 : vector<8x8xf32> to vector<8x8x1xf32>
    %234 = vector.broadcast %233 : vector<8x8x1xf32> to vector<8x8x8xf32>
    %235 = arith.subf %231, %234 : vector<8x8x8xf32>
    %236 = math.exp %235 : vector<8x8x8xf32>
    %cst_88 = arith.constant dense<0.000000e+00> : vector<8x8xf32>
    %237 = vector.multi_reduction <add>, %236, %cst_88 [2] : vector<8x8x8xf32> to vector<8x8xf32>
    %238 = vector.shape_cast %237 : vector<8x8xf32> to vector<8x8x1xf32>
    %239 = tpu.reciprocal %238 {approx = true} : vector<8x8x1xf32> -> vector<8x8x1xf32>
    %240 = vector.broadcast %239 : vector<8x8x1xf32> to vector<8x8x8xf32>
    %241 = arith.mulf %236, %240 : vector<8x8x8xf32>
    %242 = arith.truncf %241 : vector<8x8x8xf32> to vector<8x8x8xbf16>
    "tpu.trace_start"() <{level = 10 : i32, message = "nqk,nkd->nqd"}> : () -> ()
    %cst_89 = arith.constant dense<0.000000e+00> : vector<8x8x8xf32>
    %243 = tpu.matmul %242, %230, %cst_89 {dimension_numbers = #tpu.dot_dimension_numbers<[2], [1], [1], [2], [0, 0, 0, 1, 1, 2], [0], [0]>} : vector<8x8x8xbf16>, vector<8x8x8xbf16>, vector<8x8x8xf32> -> vector<8x8x8xf32>
    "tpu.trace_stop"() : () -> ()
    %244 = vector.shape_cast %243 : vector<8x8x8xf32> to vector<4x16x8xf32>
    %245 = vector.extract_strided_slice %244 {offsets = [0, 0, 0], sizes = [1, 16, 8], strides = [1, 1, 1]} : vector<4x16x8xf32> to vector<1x16x8xf32>
    %246 = vector.shape_cast %245 : vector<1x16x8xf32> to vector<16x8xf32>
    %247 = vector.extract_strided_slice %244 {offsets = [1, 0, 0], sizes = [1, 16, 8], strides = [1, 1, 1]} : vector<4x16x8xf32> to vector<1x16x8xf32>
    %248 = vector.shape_cast %247 : vector<1x16x8xf32> to vector<16x8xf32>
    %249 = vector.extract_strided_slice %244 {offsets = [2, 0, 0], sizes = [1, 16, 8], strides = [1, 1, 1]} : vector<4x16x8xf32> to vector<1x16x8xf32>
    %250 = vector.shape_cast %249 : vector<1x16x8xf32> to vector<16x8xf32>
    %251 = vector.extract_strided_slice %244 {offsets = [3, 0, 0], sizes = [1, 16, 8], strides = [1, 1, 1]} : vector<4x16x8xf32> to vector<1x16x8xf32>
    %252 = vector.shape_cast %251 : vector<1x16x8xf32> to vector<16x8xf32>
    %253 = tpu.concatenate %246, %248, %250, %252 in 1 : vector<16x8xf32>, vector<16x8xf32>, vector<16x8xf32>, vector<16x8xf32> -> vector<16x32xf32>
    %254 = arith.truncf %253 : vector<16x32xf32> to vector<16x32xbf16>
    %cst_90 = arith.constant dense<0.000000e+00> : vector<16x32xf32>
    %255 = tpu.matmul %254, %165, %cst_90 {dimension_numbers = #tpu.dot_dimension_numbers<[1], [0], [0], [1], [0, 0, 1, 1], [], []>} : vector<16x32xbf16>, vector<32x32xbf16>, vector<16x32xf32> -> vector<16x32xf32>
    %256 = vector.broadcast %166 : vector<1x32xf32> to vector<16x32xf32>
    %257 = arith.addf %255, %256 : vector<16x32xf32>
    %258 = arith.addf %160, %257 : vector<16x32xf32>
    %cst_91 = arith.constant dense<0.000000e+00> : vector<16xf32>
    %259 = vector.multi_reduction <add>, %258, %cst_91 [1] : vector<16x32xf32> to vector<16xf32>
    %260 = vector.shape_cast %259 : vector<16xf32> to vector<16x1xf32>
    %cst_92 = arith.constant 3.200000e+01 : f32
    %261 = vector.broadcast %cst_92 : f32 to vector<16x1xf32>
    %262 = arith.divf %260, %261 : vector<16x1xf32>
    %263 = vector.broadcast %262 : vector<16x1xf32> to vector<16x32xf32>
    %264 = arith.subf %258, %263 : vector<16x32xf32>
    %265 = arith.mulf %264, %264 : vector<16x32xf32>
    %cst_93 = arith.constant dense<0.000000e+00> : vector<16xf32>
    %266 = vector.multi_reduction <add>, %265, %cst_93 [1] : vector<16x32xf32> to vector<16xf32>
    %267 = vector.shape_cast %266 : vector<16xf32> to vector<16x1xf32>
    %cst_94 = arith.constant 3.200000e+01 : f32
    %268 = vector.broadcast %cst_94 : f32 to vector<16x1xf32>
    %269 = arith.divf %267, %268 : vector<16x1xf32>
    %270 = vector.broadcast %262 : vector<16x1xf32> to vector<16x32xf32>
    %271 = arith.subf %258, %270 : vector<16x32xf32>
    %cst_95 = arith.constant 9.99999974E-6 : f32
    %272 = vector.broadcast %cst_95 : f32 to vector<16x1xf32>
    %273 = arith.addf %269, %272 : vector<16x1xf32>
    %274 = math.rsqrt %273 : vector<16x1xf32>
    %275 = vector.broadcast %274 : vector<16x1xf32> to vector<16x32xf32>
    %276 = arith.mulf %271, %275 : vector<16x32xf32>
    %277 = vector.broadcast %167 : vector<1x32xf32> to vector<16x32xf32>
    %278 = arith.mulf %276, %277 : vector<16x32xf32>
    %279 = vector.broadcast %168 : vector<1x32xf32> to vector<16x32xf32>
    %280 = arith.addf %278, %279 : vector<16x32xf32>
    %281 = vector.shape_cast %280 : vector<16x32xf32> to vector<2x8x32xf32>
    %c1 = arith.constant 1 : index
    %c0_96 = arith.constant 0 : index
    %c0_97 = arith.constant 0 : index
    %c0_98 = arith.constant 0 : index
    %282 = vector.load %arg32[%c1, %c0_96, %c0_97, %c0_98] : memref<2x2x8x32xf32, #tpu.memory_space<vmem>>, vector<1x2x8x32xf32>
    %283 = vector.shape_cast %282 : vector<1x2x8x32xf32> to vector<2x8x32xf32>
    %284 = vector.shape_cast %281 : vector<2x8x32xf32> to vector<1x2x8x32xf32>
    tpu.vector_store %arg32[%c1, %c0_96, %c0_97, %c0_98], %284 {strides = array<i32>} : memref<2x2x8x32xf32, #tpu.memory_space<vmem>>, vector<1x2x8x32xf32>,
    %285 = arith.truncf %280 : vector<16x32xf32> to vector<16x32xbf16>
    %cst_99 = arith.constant dense<0.000000e+00> : vector<16x64xf32>
    %286 = tpu.matmul %285, %169, %cst_99 {dimension_numbers = #tpu.dot_dimension_numbers<[1], [0], [0], [1], [0, 0, 1, 1], [], []>} : vector<16x32xbf16>, vector<32x64xbf16>, vector<16x64xf32> -> vector<16x64xf32>
    %287 = vector.broadcast %170 : vector<1x64xf32> to vector<16x64xf32>
    %288 = arith.addf %286, %287 : vector<16x64xf32>
    %cst_100 = arith.constant 0.000000e+00 : f32
    %289 = vector.broadcast %cst_100 : f32 to vector<16x64xf32>
    %290 = arith.maximumf %288, %289 : vector<16x64xf32>
    %291 = arith.truncf %290 : vector<16x64xf32> to vector<16x64xbf16>
    %cst_101 = arith.constant dense<0.000000e+00> : vector<16x32xf32>
    %292 = tpu.matmul %291, %171, %cst_101 {dimension_numbers = #tpu.dot_dimension_numbers<[1], [0], [0], [1], [0, 0, 1, 1], [], []>} : vector<16x64xbf16>, vector<64x32xbf16>, vector<16x32xf32> -> vector<16x32xf32>
    %293 = vector.broadcast %172 : vector<1x32xf32> to vector<16x32xf32>
    %294 = arith.addf %292, %293 : vector<16x32xf32>
    %295 = arith.addf %280, %294 : vector<16x32xf32>
    %cst_102 = arith.constant dense<0.000000e+00> : vector<16xf32>
    %296 = vector.multi_reduction <add>, %295, %cst_102 [1] : vector<16x32xf32> to vector<16xf32>
    %297 = vector.shape_cast %296 : vector<16xf32> to vector<16x1xf32>
    %cst_103 = arith.constant 3.200000e+01 : f32
    %298 = vector.broadcast %cst_103 : f32 to vector<16x1xf32>
    %299 = arith.divf %297, %298 : vector<16x1xf32>
    %300 = vector.broadcast %299 : vector<16x1xf32> to vector<16x32xf32>
    %301 = arith.subf %295, %300 : vector<16x32xf32>
    %302 = arith.mulf %301, %301 : vector<16x32xf32>
    %cst_104 = arith.constant dense<0.000000e+00> : vector<16xf32>
    %303 = vector.multi_reduction <add>, %302, %cst_104 [1] : vector<16x32xf32> to vector<16xf32>
    %304 = vector.shape_cast %303 : vector<16xf32> to vector<16x1xf32>
    %cst_105 = arith.constant 3.200000e+01 : f32
    %305 = vector.broadcast %cst_105 : f32 to vector<16x1xf32>
    %306 = arith.divf %304, %305 : vector<16x1xf32>
    %307 = vector.broadcast %299 : vector<16x1xf32> to vector<16x32xf32>
    %308 = arith.subf %295, %307 : vector<16x32xf32>
    %cst_106 = arith.constant 9.99999974E-6 : f32
    %309 = vector.broadcast %cst_106 : f32 to vector<16x1xf32>
    %310 = arith.addf %306, %309 : vector<16x1xf32>
    %311 = math.rsqrt %310 : vector<16x1xf32>
    %312 = vector.broadcast %311 : vector<16x1xf32> to vector<16x32xf32>
    %313 = arith.mulf %308, %312 : vector<16x32xf32>
    %314 = vector.broadcast %173 : vector<1x32xf32> to vector<16x32xf32>
    %315 = arith.mulf %313, %314 : vector<16x32xf32>
    %316 = vector.broadcast %174 : vector<1x32xf32> to vector<16x32xf32>
    %317 = arith.addf %315, %316 : vector<16x32xf32>
    %318 = vector.shape_cast %317 : vector<16x32xf32> to vector<2x8x32xf32>
    %c0_107 = arith.constant 0 : index
    %c0_108 = arith.constant 0 : index
    %c0_109 = arith.constant 0 : index
    %319 = vector.load %arg31[%c0_107, %c0_108, %c0_109] : memref<2x8x32xf32, #tpu.memory_space<vmem>>, vector<2x8x32xf32>
    tpu.vector_store %arg31[%c0_107, %c0_108, %c0_109], %318 {strides = array<i32>} : memref<2x8x32xf32, #tpu.memory_space<vmem>>, vector<2x8x32xf32>,
    return
  }
  func.func @transform_0(%arg0: i32) -> (i32, i32, i32) {
    %c0_i32 = arith.constant 0 : i32
    %c0_i32_0 = arith.constant 0 : i32
    %c0_i32_1 = arith.constant 0 : i32
    return %arg0, %c0_i32, %c0_i32_0 : i32, i32, i32
  }
  func.func @transform_1(%arg0: i32) -> (i32, i32, i32) {
    %c0_i32 = arith.constant 0 : i32
    %c0_i32_0 = arith.constant 0 : i32
    %c0_i32_1 = arith.constant 0 : i32
    return %arg0, %c0_i32, %c0_i32_0 : i32, i32, i32
  }
  func.func @transform_2(%arg0: i32) -> (i32, i32) {
    %c0_i32 = arith.constant 0 : i32
    %c0_i32_0 = arith.constant 0 : i32
    %c0_i32_1 = arith.constant 0 : i32
    return %c0_i32, %c0_i32_0 : i32, i32
  }
  func.func @transform_3(%arg0: i32) -> (i32, i32) {
    %c0_i32 = arith.constant 0 : i32
    %c0_i32_0 = arith.constant 0 : i32
    %c0_i32_1 = arith.constant 0 : i32
    return %c0_i32, %c0_i32_0 : i32, i32
  }
  func.func @transform_4(%arg0: i32) -> (i32, i32) {
    %c0_i32 = arith.constant 0 : i32
    %c0_i32_0 = arith.constant 0 : i32
    %c0_i32_1 = arith.constant 0 : i32
    return %c0_i32, %c0_i32_0 : i32, i32
  }
  func.func @transform_5(%arg0: i32) -> (i32, i32) {
    %c0_i32 = arith.constant 0 : i32
    %c0_i32_0 = arith.constant 0 : i32
    %c0_i32_1 = arith.constant 0 : i32
    return %c0_i32, %c0_i32_0 : i32, i32
  }
  func.func @transform_6(%arg0: i32) -> (i32, i32) {
    %c0_i32 = arith.constant 0 : i32
    %c0_i32_0 = arith.constant 0 : i32
    %c0_i32_1 = arith.constant 0 : i32
    return %c0_i32, %c0_i32_0 : i32, i32
  }
  func.func @transform_7(%arg0: i32) -> (i32, i32) {
    %c0_i32 = arith.constant 0 : i32
    %c0_i32_0 = arith.constant 0 : i32
    %c0_i32_1 = arith.constant 0 : i32
    return %c0_i32, %c0_i32_0 : i32, i32
  }
  func.func @transform_8(%arg0: i32) -> (i32, i32) {
    %c0_i32 = arith.constant 0 : i32
    %c0_i32_0 = arith.constant 0 : i32
    %c0_i32_1 = arith.constant 0 : i32
    return %c0_i32, %c0_i32_0 : i32, i32
  }
  func.func @transform_9(%arg0: i32) -> (i32, i32) {
    %c0_i32 = arith.constant 0 : i32
    %c0_i32_0 = arith.constant 0 : i32
    %c0_i32_1 = arith.constant 0 : i32
    return %c0_i32, %c0_i32_0 : i32, i32
  }
  func.func @transform_10(%arg0: i32) -> (i32, i32) {
    %c0_i32 = arith.constant 0 : i32
    %c0_i32_0 = arith.constant 0 : i32
    %c0_i32_1 = arith.constant 0 : i32
    return %c0_i32, %c0_i32_0 : i32, i32
  }
  func.func @transform_11(%arg0: i32) -> (i32, i32) {
    %c0_i32 = arith.constant 0 : i32
    %c0_i32_0 = arith.constant 0 : i32
    %c0_i32_1 = arith.constant 0 : i32
    return %c0_i32, %c0_i32_0 : i32, i32
  }
  func.func @transform_12(%arg0: i32) -> (i32, i32) {
    %c0_i32 = arith.constant 0 : i32
    %c0_i32_0 = arith.constant 0 : i32
    %c0_i32_1 = arith.constant 0 : i32
    return %c0_i32, %c0_i32_0 : i32, i32
  }
  func.func @transform_13(%arg0: i32) -> (i32, i32) {
    %c0_i32 = arith.constant 0 : i32
    %c0_i32_0 = arith.constant 0 : i32
    %c0_i32_1 = arith.constant 0 : i32
    return %c0_i32, %c0_i32_0 : i32, i32
  }
  func.func @transform_14(%arg0: i32) -> (i32, i32) {
    %c0_i32 = arith.constant 0 : i32
    %c0_i32_0 = arith.constant 0 : i32
    %c0_i32_1 = arith.constant 0 : i32
    return %c0_i32, %c0_i32_0 : i32, i32
  }
  func.func @transform_15(%arg0: i32) -> (i32, i32) {
    %c0_i32 = arith.constant 0 : i32
    %c0_i32_0 = arith.constant 0 : i32
    %c0_i32_1 = arith.constant 0 : i32
    return %c0_i32, %c0_i32_0 : i32, i32
  }
  func.func @transform_16(%arg0: i32) -> (i32, i32) {
    %c0_i32 = arith.constant 0 : i32
    %c0_i32_0 = arith.constant 0 : i32
    %c0_i32_1 = arith.constant 0 : i32
    return %c0_i32, %c0_i32_0 : i32, i32
  }
  func.func @transform_17(%arg0: i32) -> (i32, i32) {
    %c0_i32 = arith.constant 0 : i32
    %c0_i32_0 = arith.constant 0 : i32
    %c0_i32_1 = arith.constant 0 : i32
    return %c0_i32, %c0_i32_0 : i32, i32
  }
  func.func @transform_18(%arg0: i32) -> (i32, i32) {
    %c0_i32 = arith.constant 0 : i32
    %c0_i32_0 = arith.constant 0 : i32
    %c0_i32_1 = arith.constant 0 : i32
    return %c0_i32, %c0_i32_0 : i32, i32
  }
  func.func @transform_19(%arg0: i32) -> (i32, i32) {
    %c0_i32 = arith.constant 0 : i32
    %c0_i32_0 = arith.constant 0 : i32
    %c0_i32_1 = arith.constant 0 : i32
    return %c0_i32, %c0_i32_0 : i32, i32
  }
  func.func @transform_20(%arg0: i32) -> (i32, i32) {
    %c0_i32 = arith.constant 0 : i32
    %c0_i32_0 = arith.constant 0 : i32
    %c0_i32_1 = arith.constant 0 : i32
    return %c0_i32, %c0_i32_0 : i32, i32
  }
  func.func @transform_21(%arg0: i32) -> (i32, i32) {
    %c0_i32 = arith.constant 0 : i32
    %c0_i32_0 = arith.constant 0 : i32
    %c0_i32_1 = arith.constant 0 : i32
    return %c0_i32, %c0_i32_0 : i32, i32
  }
  func.func @transform_22(%arg0: i32) -> (i32, i32) {
    %c0_i32 = arith.constant 0 : i32
    %c0_i32_0 = arith.constant 0 : i32
    %c0_i32_1 = arith.constant 0 : i32
    return %c0_i32, %c0_i32_0 : i32, i32
  }
  func.func @transform_23(%arg0: i32) -> (i32, i32) {
    %c0_i32 = arith.constant 0 : i32
    %c0_i32_0 = arith.constant 0 : i32
    %c0_i32_1 = arith.constant 0 : i32
    return %c0_i32, %c0_i32_0 : i32, i32
  }
  func.func @transform_24(%arg0: i32) -> (i32, i32) {
    %c0_i32 = arith.constant 0 : i32
    %c0_i32_0 = arith.constant 0 : i32
    %c0_i32_1 = arith.constant 0 : i32
    return %c0_i32, %c0_i32_0 : i32, i32
  }
  func.func @transform_25(%arg0: i32) -> (i32, i32) {
    %c0_i32 = arith.constant 0 : i32
    %c0_i32_0 = arith.constant 0 : i32
    %c0_i32_1 = arith.constant 0 : i32
    return %c0_i32, %c0_i32_0 : i32, i32
  }
  func.func @transform_26(%arg0: i32) -> (i32, i32) {
    %c0_i32 = arith.constant 0 : i32
    %c0_i32_0 = arith.constant 0 : i32
    %c0_i32_1 = arith.constant 0 : i32
    return %c0_i32, %c0_i32_0 : i32, i32
  }
  func.func @transform_27(%arg0: i32) -> (i32, i32) {
    %c0_i32 = arith.constant 0 : i32
    %c0_i32_0 = arith.constant 0 : i32
    %c0_i32_1 = arith.constant 0 : i32
    return %c0_i32, %c0_i32_0 : i32, i32
  }
  func.func @transform_28(%arg0: i32) -> (i32, i32) {
    %c0_i32 = arith.constant 0 : i32
    %c0_i32_0 = arith.constant 0 : i32
    %c0_i32_1 = arith.constant 0 : i32
    return %c0_i32, %c0_i32_0 : i32, i32
  }
  func.func @transform_29(%arg0: i32) -> (i32, i32) {
    %c0_i32 = arith.constant 0 : i32
    %c0_i32_0 = arith.constant 0 : i32
    %c0_i32_1 = arith.constant 0 : i32
    return %c0_i32, %c0_i32_0 : i32, i32
  }
  func.func @transform_30(%arg0: i32) -> (i32, i32, i32) {
    %c0_i32 = arith.constant 0 : i32
    %c0_i32_0 = arith.constant 0 : i32
    %c0_i32_1 = arith.constant 0 : i32
    return %arg0, %c0_i32, %c0_i32_0 : i32, i32, i32
  }
  func.func @transform_31(%arg0: i32) -> (i32, i32, i32, i32) {
    %c0_i32 = arith.constant 0 : i32
    %c0_i32_0 = arith.constant 0 : i32
    %c0_i32_1 = arith.constant 0 : i32
    %c0_i32_2 = arith.constant 0 : i32
    return %c0_i32, %arg0, %c0_i32_0, %c0_i32_1 : i32, i32, i32, i32
  }
}

</mosaic_0001>

<bundles_post_ra>
// kernel: transformer_encoder.1
= control target key start
LH: loop header
LB: loop body
LE: loop exit
PB: predicated region body
PF: predicated region fallthrough
CT: control target
= control target key end

     0   :  { %s2315_s6 = smov 1   ;;  %s2316_s10 = smov 2   ;;  %s2864_s0 = inlined_call_operand.smem [shape: u32[32], index: -1, kind: input, shape index: {}] }
   0x1   :  { %s2364_s5 = sld [smem:[%s2864_s0]]   ;;  %s2317_s14 = smov 3  }
   0x2   :  { %s2369_s9 = sld [smem:[%s2864_s0 + %s2315_s6]]   ;;  %s2318_s18 = smov 4  }
   0x3   :  { %s2374_s13 = sld [smem:[%s2864_s0 + %s2316_s10]]   ;;  %s2319_s22 = smov 5  }
   0x4   :  { %s2379_s17 = sld [smem:[%s2864_s0 + %s2317_s14]]   ;;  %s2320_s26 = smov 6  }
   0x5   :  { %s2384_s21 = sld [smem:[%s2864_s0 + %s2318_s18]]   ;;  %s2321_s30 = smov 7  }
   0x6   :  { %s2389_s25 = sld [smem:[%s2864_s0 + %s2319_s22]]   ;;  %s2322_s4 = smov 8  }
   0x7   :  { %s2394_s29 = sld [smem:[%s2864_s0 + %s2320_s26]]   ;;  %s2323_s10 = smov 9  }
   0x8   :  { %s2399_s3 = sld [smem:[%s2864_s0 + %s2321_s30]]   ;;  %s2324_s15 = smov 10  }
   0x9   :  { %s2404_s8 = sld [smem:[%s2864_s0 + %s2322_s4]]   ;;  %s2325_s20 = smov 11  }
   0xa   :  { %s2409_s14 = sld [smem:[%s2864_s0 + %s2323_s10]]   ;;  %s2326_s26 = smov 12  }
   0xb   :  { %s2414_s19 = sld [smem:[%s2864_s0 + %s2324_s15]]   ;;  %s2327_s1 = smov 13  }
   0xc   :  { %s2419_s24 = sld [smem:[%s2864_s0 + %s2325_s20]]   ;;  %s2328_s7 = smov 14  }
   0xd   :  { %s2424_s30 = sld [smem:[%s2864_s0 + %s2326_s26]]   ;;  %s2329_s15 = smov 15  }
   0xe   :  { %s2429_s6 = sld [smem:[%s2864_s0 + %s2327_s1]]   ;;  %s2330_s22 = smov 16  }
   0xf   :  { %s2434_s12 = sld [smem:[%s2864_s0 + %s2328_s7]]   ;;  %s2331_s28 = smov 17  }
  0x10   :  { %s2439_s20 = sld [smem:[%s2864_s0 + %s2329_s15]]   ;;  %s2332_s7 = smov 18  }
  0x11   :  { %s2444_s27 = sld [smem:[%s2864_s0 + %s2330_s22]]   ;;  %s2333_s15 = smov 19  }
  0x12   :  { %s2449_s4 = sld [smem:[%s2864_s0 + %s2331_s28]]   ;;  %s2334_s22 = smov 20  }
  0x13   :  { %s2335_s28 = smov 21  }
  0x15   :  { %2870 = sst [smem:[#allocation5_spill]] %s2434_s12 }
  0x16   :  { %2871 = sst [smem:[#allocation6_spill]] %s2439_s20 }
  0x17   :  { %2872 = sst [smem:[#allocation7_spill]] %s2444_s27 }
  0x18   :  { %2873 = sst [smem:[#allocation8_spill]] %s2449_s4 }
  0x19   :  { %s2454_s12 = sld [smem:[%s2864_s0 + %s2332_s7]]   ;;  %s2336_s7 = smov 22  }
  0x1a   :  { %s2459_s20 = sld [smem:[%s2864_s0 + %s2333_s15]]   ;;  %s2337_s15 = smov 23  }
  0x1b   :  { %s2464_s27 = sld [smem:[%s2864_s0 + %s2334_s22]]   ;;  %s2338_s22 = smov 24  }
  0x1c   :  { %s2469_s4 = sld [smem:[%s2864_s0 + %s2335_s28]]   ;;  %s2339_s28 = smov 25  }
  0x1f   :  { %2874 = sst [smem:[#allocation9_spill]] %s2454_s12 }
  0x20   :  { %2875 = sst [smem:[#allocation10_spill]] %s2459_s20 }
  0x21   :  { %2876 = sst [smem:[#allocation11_spill]] %s2464_s27 }
  0x22   :  { %2877 = sst [smem:[#allocation12_spill]] %s2469_s4 }
  0x23   :  { %s2474_s12 = sld [smem:[%s2864_s0 + %s2336_s7]]   ;;  %s2340_s7 = smov 26  }
  0x24   :  { %s2479_s20 = sld [smem:[%s2864_s0 + %s2337_s15]]   ;;  %s2341_s15 = smov 27  }
  0x25   :  { %s2484_s27 = sld [smem:[%s2864_s0 + %s2338_s22]]   ;;  %s2342_s22 = smov 28  }
  0x26   :  { %s2489_s4 = sld [smem:[%s2864_s0 + %s2339_s28]]   ;;  %s2343_s28 = smov 29  }
  0x29   :  { %2878 = sst [smem:[#allocation13_spill]] %s2474_s12 }
  0x2a   :  { %2879 = sst [smem:[#allocation14_spill]] %s2479_s20 }
  0x2b   :  { %2880 = sst [smem:[#allocation15_spill]] %s2484_s27 }
  0x2c   :  { %2881 = sst [smem:[#allocation16_spill]] %s2489_s4 }
  0x2d   :  { %s2494_s12 = sld [smem:[%s2864_s0 + %s2340_s7]]   ;;  %s2344_s7 = smov 30  }
  0x2e   :  { %s2499_s20 = sld [smem:[%s2864_s0 + %s2341_s15]]   ;;  %s2345_s15 = smov 31  }
  0x2f   :  { %s2504_s27 = sld [smem:[%s2864_s0 + %s2342_s22]]  }
  0x30   :  { %s2509_s4 = sld [smem:[%s2864_s0 + %s2343_s28]]  }
  0x33   :  { %2882 = sst [smem:[#allocation17_spill]] %s2494_s12 }
  0x34   :  { %2883 = sst [smem:[#allocation18_spill]] %s2499_s20 }
  0x35   :  { %s2514_s12 = sld [smem:[%s2864_s0 + %s2344_s7]]  }
  0x36   :  { %s2519_s20 = sld [smem:[%s2864_s0 + %s2345_s15]]  }
  0x37   :  { %v2053_v0 = vld [vmem:[%s2374_s13 + $0x8] sm:$0xff]  ;;  %v2523_v1 = vld [vmem:[%s2364_s5] sm:$0xff]  ;;  %vm187_vm0 = vcmask 261120  }
  0x38   :  { %v2526_v2 = vld [vmem:[%s2364_s5 + $0x8] sm:$0xff]  ;;  %v133_v3 = vld [vmem:[%s2369_s9] sm:$0xff]  ;;  %197 = vmatpush.bf16.msra.mxu0 %v2053_v0 }
  0x39   :  { %v134_v4 = vld [vmem:[%s2369_s9 + $0x8] sm:$0xff]  ;;  %v2052_v5 = vld [vmem:[%s2374_s13] sm:$0xff]  ;;  %v168_v6 = vadd.f32 %v133_v3, %v2523_v1 }
  0x3a   :  { %v169_v7 = vadd.f32 %v134_v4, %v2526_v2 }
  0x3c   :  { %v170_v8 = vpack.c.bf16 %v169_v7, %v168_v6  ;;  %198 = vmatpush.bf16.msra.mxu0 %v2052_v5 }
  0x3d   :  { %69 = vsyncpa [#allocation3], 0  ;;  %v2187_v10 = vld [vmem:[%s2379_s17] ss:$0 sm:$0xff]  ;;  %s2346_s0 = smov 104   ;;  %s2347_s5 = smov 120   ;;  %v171_v54 = vpack.c.bf16 %v2526_v2, %v2523_v1 }
  0x3e   :  { %s2348_s13 = smov 96   ;;  %s2349_s17 = smov 112   ;;  %vm298_vm1 = vcmask 64512   ;;  %v2055_v52 = vld [vmem:[%s2384_s21 + $0x8] sm:$0xff]  ;;  %v2054_v53 = vld [vmem:[%s2384_s21] sm:$0xff]  ;;  %vm585_vm2 = vcmask 1043456  }
  0x3f   :  { %1920 = vmatmul.msk.bf16.vlgmr.msra.gmra.mxu0 %vm187_vm0, %v170_v8  ;;  %229 = vmatpush.bf16.msra.mxu1 %v2055_v52  ;;  %s2350_s21 = smov 8   ;;  %s2352_s22 = smov 16   ;;  %vm761_vm3 = vcmask 130048   ;;  %vm764_vm4 = vcmask 195584   ;;  %vm928_vm12 = vcmask 523264  }
  0x40   :  { %s2893_s23 = sld [smem:[#allocation13_spill]]  ;;  %s1865_s7 = sshll.u32 %s2514_s12, 4  ;;  %s1866_s7 = int_to_ptr.hbm [resolvable:$true] %s1865_s7 }
  0x41   :  { %s2894_s26 = sld [smem:[#allocation14_spill]]  ;;  %s2305_s11 = scalar_lea.hbm %s2514_s12, 16 }
  0x42   :  { %s2895_s28 = sld [smem:[#allocation17_spill]] }
  0x43   :  { %230 = vmatpush.bf16.msra.mxu1 %v2054_v53  ;;  %s2896_s1 = sld [smem:[#allocation16_spill]] }
  0x44   :  { %s2897_s2 = sld [smem:[#allocation18_spill]] }
  0x46   :  { %1929 = vmatmul.msk.bf16.vlgmr.msra.gmra.mxu1 %vm187_vm0, %v171_v54 }
  0xbc   :  { %v200_v9 = vpop.f32.mrf.mxu0 }
  0xbd   :  { %v201_v11 = vadd.f32 %v2187_v10, %v200_v9 }
  0xbf   :  { %v257_v16 = vpack.c.bf16 %v201_v11, %v201_v11 }
  0xc1   :  { %v294_v19 = vunpack.c.l.b16 %v257_v16 }
  0xc3   :  { %v295_v20 = vpack.c.b16 %v294_v19, %v294_v19 }
  0xc4   :  { %v202_v12 = vpop.f32.mrf.mxu0 }
  0xc5   :  { %v203_v13 = vadd.f32 %v2187_v10, %v202_v12  ;;  %v2188_v12 = vld [vmem:[%s2389_s25] ss:$0 sm:$0xff]  ;;  %s2351_s25 = smov 24  }
  0xc7   :  { %v2127_v14 = vpack.i.bf16 %v203_v13, %v201_v11  ;;  %v258_v15 = vpack.c.bf16 %v203_v13, %v203_v13  ;;  %v232_v11 = vpop.f32.mrf.mxu1 }
  0xc8   :  { %v233_v13 = vadd.f32 %v2188_v12, %v232_v11 }
  0xc9   :  { %2128 = vrot.lane.b32.xlu1 %v2127_v14, %s2346_s0  ;;  %2118 = vrot.lane.b32.xlu0 %v2127_v14, %s2347_s5  ;;  %v319_v17 = vunpack.c.l.b16 %v258_v15 }
  0xcb   :  { %v320_v18 = vpack.c.b16 %v319_v17, %v319_v17 }
  0xcd   :  { %321 = vrot.lane.b32.xlu2 %v320_v18, %s2348_s13 }
  0xd1   :  { %2123 = vrot.lane.b32.xlu0 %v2127_v14, %s2349_s17  ;;  %296 = vrot.lane.b32.xlu1 %v295_v20, %s2348_s13  ;;  %v234_v14 = vpop.f32.mrf.mxu1 }
 0x127   :  { %v322_v21 = vpop.permute.xlu2 %321 }
 0x128   :  { %v327_v22 = vsel %vm298_vm1, %v322_v21, 0 }
 0x129   :  { %336 = vmatpush.bf16.xpose.msra.mxu3 %v327_v22 }
 0x130   :  { %1931 = vmatmul.msk.bf16.vlgmr.msra.gmra.mxu3 %vm298_vm1, %v258_v15  ;;  %v235_v15 = vadd.f32 %v2188_v12, %v234_v14 }
 0x132   :  { %v286_v18 = vpack.c.bf16 %v235_v15, %v235_v15  ;;  %v2574_v19 = vpack.i.bf16 %v235_v15, %v233_v13 }
 0x134   :  { %v606_v20 = vsel %vm585_vm2, %v286_v18, 0 }
 0x13b   :  { %v2129_v23 = vpop.permute.xlu1 %2128  ;;  %v2119_v24 = vpop.permute.xlu0 %2118 }
 0x13c   :  { %v2121_v25 = vunpack.i.h.bf16 %v2119_v24  ;;  %v2120_v26 = vunpack.i.l.bf16 %v2119_v24  ;;  %v2130_v27 = vunpack.i.l.bf16 %v2129_v23  ;;  %v2131_v43 = vunpack.i.h.bf16 %v2129_v23 }
 0x13e   :  { %v260_v28 = vpack.c.bf16 %v2121_v25, %v2121_v25  ;;  %v259_v29 = vpack.c.bf16 %v2120_v26, %v2120_v26  ;;  %v263_v32 = vpack.c.bf16 %v2130_v27, %v2130_v27  ;;  %v264_v49 = vpack.c.bf16 %v2131_v43, %v2131_v43 }
 0x140   :  { %v367_v30 = vunpack.c.l.b16 %v260_v28  ;;  %v343_v31 = vunpack.c.l.b16 %v259_v29  ;;  %v439_v40 = vunpack.c.l.b16 %v263_v32  ;;  %v463_v50 = vunpack.c.l.b16 %v264_v49 }
 0x142   :  { %v368_v33 = vpack.c.b16 %v367_v30, %v367_v30  ;;  %v344_v34 = vpack.c.b16 %v343_v31, %v343_v31  ;;  %v440_v46 = vpack.c.b16 %v439_v40, %v439_v40  ;;  %v464_v51 = vpack.c.b16 %v463_v50, %v463_v50 }
 0x143   :  { %v2124_v35 = vpop.permute.xlu0 %2123  ;;  %v297_v36 = vpop.permute.xlu1 %296 }
 0x144   :  { %v2126_v37 = vunpack.i.h.bf16 %v2124_v35  ;;  %v2125_v38 = vunpack.i.l.bf16 %v2124_v35  ;;  %369 = vrot.lane.b32.xlu0 %v368_v33, %s2348_s13  ;;  %345 = vrot.lane.b32.xlu2 %v344_v34, %s2348_s13  ;;  %v303_v39 = vsel %vm298_vm1, %v297_v36, 0 }
 0x145   :  { %312 = vmatpush.bf16.xpose.msra.mxu2 %v303_v39 }
 0x146   :  { %v262_v41 = vpack.c.bf16 %v2126_v37, %v2126_v37  ;;  %v261_v42 = vpack.c.bf16 %v2125_v38, %v2125_v38 }
 0x148   :  { %v415_v44 = vunpack.c.l.b16 %v262_v41  ;;  %v391_v45 = vunpack.c.l.b16 %v261_v42 }
 0x14a   :  { %v416_v47 = vpack.c.b16 %v415_v44, %v415_v44  ;;  %v392_v48 = vpack.c.b16 %v391_v45, %v391_v45 }
 0x14c   :  { %441 = vrot.lane.b32.xlu0 %v440_v46, %s2348_s13  ;;  %417 = vrot.lane.b32.xlu2 %v416_v47, %s2348_s13 }
 0x14d   :  { %393 = vrot.lane.b32.xlu1 %v392_v48, %s2348_s13  ;;  %1930 = vmatmul.msk.bf16.vlgmr.msra.gmra.mxu2 %vm298_vm1, %v257_v16  ;;  %v285_v16 = vpack.c.bf16 %v233_v13, %v233_v13 }
 0x14f   :  { %v587_v17 = vsel %vm585_vm2, %v285_v16, 0 }
 0x155   :  { %465 = vrot.lane.b32.xlu1 %v464_v51, %s2348_s13 }
 0x19e   :  { %v346_v55 = vpop.permute.xlu2 %345 }
 0x19f   :  { %v351_v56 = vsel %vm298_vm1, %v346_v55, 0 }
 0x1a0   :  { %360 = vmatpush.bf16.xpose.msrb.mxu0 %v351_v56 }
 0x1a6   :  { %v418_v57 = vpop.permute.xlu2 %417 }
 0x1a7   :  { %1932 = vmatmul.msk.bf16.vlgmr.msrb.gmra.mxu0 %vm298_vm1, %v259_v29  ;;  %v423_v58 = vsel %vm298_vm1, %v418_v57, 0 }
 0x1a8   :  { %432 = vmatpush.bf16.xpose.msrb.mxu3 %v423_v58 }
 0x1af   :  { %1935 = vmatmul.msk.bf16.vlgmr.msrb.gmra.mxu3 %vm298_vm1, %v262_v41 }
 0x1b0   :  { %615 = vmatpush.bf16.msra.mxu3 %v606_v20 }
 0x1b3   :  { %v2559_v59 = vpop.f32.mrf.mxu3 }
 0x1b4   :  { %v489_v60 = vsel %vm298_vm1, %v2559_v59, -inf }
 0x1b5   :  { %490 = vmax.xlane.f32.xlu0 %v489_v60 }
 0x1b6   :  { %v370_v61 = vpop.permute.xlu0 %369 }
 0x1b7   :  { %v375_v62 = vsel %vm298_vm1, %v370_v61, 0 }
 0x1b8   :  { %384 = vmatpush.bf16.xpose.msrb.mxu1 %v375_v62 }
 0x1bb   :  { %v340_v63 = vpop.f32.mrf.mxu3 }
 0x1be   :  { %v442_v0 = vpop.permute.xlu0 %441 }
 0x1bf   :  { %v447_v3 = vsel %vm298_vm1, %v442_v0, 0  ;;  %v394_v4 = vpop.permute.xlu1 %393  ;;  %1933 = vmatmul.msk.bf16.vlgmr.msrb.gmra.mxu1 %vm298_vm1, %v260_v28 }
 0x1c0   :  { %v399_v5 = vsel %vm298_vm1, %v394_v4, 0  ;;  %456 = vmatpush.bf16.xpose.msra.mxu0 %v447_v3 }
 0x1c1   :  { %408 = vmatpush.bf16.xpose.msrb.mxu2 %v399_v5 }
 0x1c7   :  { %v466_v6 = vpop.permute.xlu1 %465  ;;  %1936 = vmatmul.msk.bf16.vlgmr.msra.gmra.mxu0 %vm298_vm1, %v263_v32 }
 0x1c8   :  { %v471_v7 = vsel %vm298_vm1, %v466_v6, 0  ;;  %1934 = vmatmul.msk.bf16.vlgmr.msrb.gmra.mxu2 %vm298_vm1, %v261_v42 }
 0x1c9   :  { %480 = vmatpush.bf16.xpose.msra.mxu1 %v471_v7  ;;  %596 = vmatpush.bf16.msra.mxu2 %v587_v17 }
 0x1d0   :  { %v314_v8 = vpop.f32.mrf.mxu2  ;;  %1937 = vmatmul.msk.bf16.vlgmr.msra.gmra.mxu1 %vm298_vm1, %v264_v49 }
 0x1d1   :  { %v486_v9 = vsel %vm298_vm1, %v314_v8, -inf }
 0x1d2   :  { %487 = vmax.xlane.f32.xlu2 %v486_v9 }
 0x1d8   :  { %v316_v10 = vpop.f32.mrf.mxu2 }
 0x224   :  { %v362_v21 = vpop.f32.mrf.mxu0 }
 0x225   :  { %v492_v22 = vsel %vm298_vm1, %v362_v21, -inf }
 0x226   :  { %493 = vmax.xlane.f32.xlu1 %v492_v22 }
 0x228   :  { %v491_v44 = vpop.xlane.xlu0 %490 }
 0x229   :  { %v511_v45 = vsub.f32 %v2559_v59, %v491_v44 }
 0x22b   :  { %v520_v46 = vmul.f32 1.442695, %v511_v45 }
 0x22c   :  { %v364_v23 = vpop.f32.mrf.mxu0 }
 0x232   :  { %v434_v24 = vpop.f32.mrf.mxu3 }
 0x233   :  { %v501_v25 = vsel %vm298_vm1, %v434_v24, -inf }
 0x234   :  { %502 = vmax.xlane.f32.xlu0 %v501_v25 }
 0x23a   :  { %v436_v26 = vpop.f32.mrf.mxu3 }
 0x23c   :  { %v386_v27 = vpop.f32.mrf.mxu1 }
 0x23d   :  { %v495_v28 = vsel %vm298_vm1, %v386_v27, -inf }
 0x23e   :  { %496 = vmax.xlane.f32.xlu2 %v495_v28 }
 0x244   :  { %v388_v29 = vpop.f32.mrf.mxu1  ;;  %v458_v30 = vpop.f32.mrf.mxu0 }
 0x245   :  { %v488_v31 = vpop.xlane.xlu2 %487  ;;  %v504_v32 = vsel %vm298_vm1, %v458_v30, -inf }
 0x246   :  { %v510_v33 = vsub.f32 %v314_v8, %v488_v31  ;;  %505 = vmax.xlane.f32.xlu1 %v504_v32 }
 0x248   :  { %v518_v34 = vmul.f32 1.442695, %v510_v33 }
 0x24a   :  { %2205 = vpow2.f32 %v518_v34 }
 0x24b   :  { %v410_v35 = vpop.f32.mrf.mxu2  ;;  %2207 = vpow2.f32 %v520_v46 }
 0x24c   :  { %v460_v36 = vpop.f32.mrf.mxu0  ;;  %v498_v37 = vsel %vm298_vm1, %v410_v35, -inf }
 0x24d   :  { %499 = vmax.xlane.f32.xlu2 %v498_v37  ;;  %v482_v38 = vpop.f32.mrf.mxu1 }
 0x24e   :  { %v507_v42 = vsel %vm298_vm1, %v482_v38, -inf }
 0x250   :  { %v2206_v39 = vpop.eup %2205 }
 0x251   :  { %v534_v40 = vsel %vm298_vm1, %v2206_v39, 0.0  ;;  %v2587_v47 = vpop.eup %2207 }
 0x252   :  { %535 = vadd.xlane.f32.xlu0 %v534_v40  ;;  %v537_v48 = vsel %vm298_vm1, %v2587_v47, 0.0 }
 0x253   :  { %v412_v41 = vpop.f32.mrf.mxu2 }
 0x255   :  { %508 = vmax.xlane.f32.xlu2 %v507_v42  ;;  %v484_v43 = vpop.f32.mrf.mxu1 }
 0x25f   :  { %2133 = vrot.lane.b32.xlu1 %v2574_v19, %s2347_s5 }
 0x289   :  { %538 = vadd.xlane.f32.xlu1 %v537_v48 }
 0x299   :  { %v494_v49 = vpop.xlane.xlu1 %493 }
 0x29a   :  { %v512_v50 = vsub.f32 %v362_v21, %v494_v49 }
 0x29c   :  { %v522_v51 = vmul.f32 1.442695, %v512_v50 }
 0x29e   :  { %2209 = vpow2.f32 %v522_v51 }
 0x2a2   :  { %2143 = vrot.lane.b32.xlu1 %v2574_v19, %s2346_s0 }
 0x2a4   :  { %v2593_v52 = vpop.eup %2209 }
 0x2a5   :  { %v540_v53 = vsel %vm298_vm1, %v2593_v52, 0.0 }
 0x2a6   :  { %541 = vadd.xlane.f32.xlu2 %v540_v53 }
 0x2a7   :  { %v503_v54 = vpop.xlane.xlu0 %502 }
 0x2a8   :  { %v515_v57 = vsub.f32 %v434_v24, %v503_v54 }
 0x2aa   :  { %v528_v59 = vmul.f32 1.442695, %v515_v57 }
 0x2b1   :  { %v497_v55 = vpop.xlane.xlu2 %496 }
 0x2b2   :  { %v513_v56 = vsub.f32 %v386_v27, %v497_v55 }
 0x2b4   :  { %v524_v58 = vmul.f32 1.442695, %v513_v56 }
 0x2b6   :  { %2211 = vpow2.f32 %v524_v58 }
 0x2b7   :  { %2213 = vpow2.f32 %v528_v59 }
 0x2b9   :  { %v506_v60 = vpop.xlane.xlu1 %505 }
 0x2ba   :  { %v516_v62 = vsub.f32 %v458_v30, %v506_v60 }
 0x2bc   :  { %v2597_v61 = vpop.eup %2211  ;;  %v530_v0 = vmul.f32 1.442695, %v516_v62 }
 0x2bd   :  { %v543_v63 = vsel %vm298_vm1, %v2597_v61, 0.0  ;;  %v2601_v5 = vpop.eup %2213 }
 0x2be   :  { %544 = vadd.xlane.f32.xlu0 %v543_v63  ;;  %2215 = vpow2.f32 %v530_v0  ;;  %v549_v8 = vsel %vm298_vm1, %v2601_v5, 0.0 }
 0x2c0   :  { %v500_v3 = vpop.xlane.xlu2 %499 }
 0x2c1   :  { %v514_v4 = vsub.f32 %v410_v35, %v500_v3 }
 0x2c3   :  { %v526_v6 = vmul.f32 1.442695, %v514_v4 }
 0x2c4   :  { %v2216_v11 = vpop.eup %2215 }
 0x2c5   :  { %2217 = vpow2.f32 %v526_v6  ;;  %v536_v7 = vpop.xlane.xlu0 %535  ;;  %v552_v17 = vsel %vm298_vm1, %v2216_v11, 0.0 }
 0x2c6   :  { %2219 = vrcp.f32 %v536_v7  ;;  %550 = vadd.xlane.f32.xlu0 %v549_v8 }
 0x2c8   :  { %v509_v9 = vpop.xlane.xlu2 %508 }
 0x2c9   :  { %v517_v10 = vsub.f32 %v482_v38, %v509_v9 }
 0x2cb   :  { %v2605_v12 = vpop.eup %2217  ;;  %v532_v13 = vmul.f32 1.442695, %v517_v10 }
 0x2cc   :  { %v2220_v14 = vpop.eup %2219  ;;  %v546_v15 = vsel %vm298_vm1, %v2605_v12, 0.0 }
 0x2cd   :  { %v566_v16 = vmul.f32 %v2220_v14, %v2206_v39  ;;  %2221 = vpow2.f32 %v532_v13  ;;  %547 = vadd.xlane.f32.xlu2 %v546_v15 }
 0x2ce   :  { %553 = vadd.xlane.f32.xlu0 %v552_v17 }
 0x2cf   :  { %v574_v18 = vpack.c.bf16 %v566_v16, %v566_v16 }
 0x2d1   :  { %1938 = vmatmul.msk.bf16.vlgmr.msra.gmra.mxu2 %vm298_vm1, %v574_v18  ;;  %v2134_v20 = vpop.permute.xlu1 %2133 }
 0x2d2   :  { %v2136_v21 = vunpack.i.h.bf16 %v2134_v20  ;;  %v2135_v22 = vunpack.i.l.bf16 %v2134_v20 }
 0x2d3   :  { %v2611_v23 = vpop.eup %2221 }
 0x2d4   :  { %v288_v24 = vpack.c.bf16 %v2136_v21, %v2136_v21  ;;  %v287_v25 = vpack.c.bf16 %v2135_v22, %v2135_v22  ;;  %v555_v26 = vsel %vm298_vm1, %v2611_v23, 0.0 }
 0x2d6   :  { %556 = vadd.xlane.f32.xlu0 %v555_v26  ;;  %v625_v27 = vsel %vm585_vm2, %v287_v25, 0  ;;  %v644_v28 = vsel %vm585_vm2, %v288_v24, 0 }
 0x2d7   :  { %634 = vmatpush.bf16.msrb.mxu0 %v625_v27  ;;  %653 = vmatpush.bf16.msrb.mxu1 %v644_v28  ;;  %v2057_v28 = vld [vmem:[%s2394_s29 + $0x8] sm:$0xff] }
 0x2e5   :  { %2138 = vrot.lane.b32.xlu2 %v2574_v19, %s2349_s17 }
 0x2fc   :  { %v539_v29 = vpop.xlane.xlu1 %538 }
 0x2fd   :  { %2223 = vrcp.f32 %v539_v29  ;;  %v2056_v29 = vld [vmem:[%s2394_s29] sm:$0xff]  ;;  %s2884_s29 = sld [smem:[#allocation9_spill]] }
 0x303   :  { %v2224_v30 = vpop.eup %2223 }
 0x304   :  { %v567_v31 = vmul.f32 %v2224_v30, %v2587_v47 }
 0x306   :  { %v575_v32 = vpack.c.bf16 %v567_v31, %v567_v31 }
 0x308   :  { %1939 = vmatmul.msk.bf16.vlgmr.msra.gmra.mxu3 %vm298_vm1, %v575_v32 }
 0x314   :  { %v2144_v33 = vpop.permute.xlu1 %2143 }
 0x315   :  { %v2146_v34 = vunpack.i.h.bf16 %v2144_v33  ;;  %v2145_v35 = vunpack.i.l.bf16 %v2144_v33 }
 0x317   :  { %v292_v36 = vpack.c.bf16 %v2146_v34, %v2146_v34  ;;  %v291_v37 = vpack.c.bf16 %v2145_v35, %v2145_v35 }
 0x319   :  { %v542_v38 = vpop.xlane.xlu2 %541  ;;  %v701_v39 = vsel %vm585_vm2, %v291_v37, 0  ;;  %v720_v40 = vsel %vm585_vm2, %v292_v36, 0 }
 0x31a   :  { %2225 = vrcp.f32 %v542_v38  ;;  %710 = vmatpush.bf16.msra.mxu0 %v701_v39  ;;  %729 = vmatpush.bf16.msra.mxu1 %v720_v40 }
 0x320   :  { %v2226_v19 = vpop.eup %2225 }
 0x321   :  { %v568_v41 = vmul.f32 %v2226_v19, %v2593_v52 }
 0x323   :  { %v576_v42 = vpack.c.bf16 %v568_v41, %v568_v41 }
 0x325   :  { %1940 = vmatmul.msk.bf16.vlgmr.msrb.gmra.mxu0 %vm298_vm1, %v576_v42 }
 0x331   :  { %v545_v43 = vpop.xlane.xlu0 %544 }
 0x332   :  { %2227 = vrcp.f32 %v545_v43 }
 0x338   :  { %v2228_v44 = vpop.eup %2227 }
 0x339   :  { %v569_v45 = vmul.f32 %v2228_v44, %v2597_v61  ;;  %v551_v46 = vpop.xlane.xlu0 %550 }
 0x33a   :  { %2229 = vrcp.f32 %v551_v46 }
 0x33b   :  { %v577_v47 = vpack.c.bf16 %v569_v45, %v569_v45  ;;  %v2189_v45 = vld [vmem:[%s2399_s3] ss:$0 sm:$0xff]  ;;  %s2885_s3 = sld [smem:[#allocation7_spill]] }
 0x33d   :  { %1941 = vmatmul.msk.bf16.vlgmr.msrb.gmra.mxu1 %vm298_vm1, %v577_v47 }
 0x340   :  { %v548_v48 = vpop.xlane.xlu2 %547  ;;  %v2230_v50 = vpop.eup %2229 }
 0x341   :  { %2231 = vrcp.f32 %v548_v48  ;;  %v554_v49 = vpop.xlane.xlu0 %553  ;;  %v571_v58 = vmul.f32 %v2230_v50, %v2601_v5 }
 0x342   :  { %2233 = vrcp.f32 %v554_v49 }
 0x343   :  { %v579_v3 = vpack.c.bf16 %v571_v58, %v571_v58 }
 0x347   :  { %v2232_v51 = vpop.eup %2231 }
 0x348   :  { %v2234_v52 = vpop.eup %2233  ;;  %v2139_v53 = vpop.permute.xlu2 %2138  ;;  %v570_v59 = vmul.f32 %v2232_v51, %v2605_v12 }
 0x349   :  { %v572_v54 = vmul.f32 %v2234_v52, %v2216_v11  ;;  %v2141_v55 = vunpack.i.h.bf16 %v2139_v53  ;;  %v2140_v56 = vunpack.i.l.bf16 %v2139_v53  ;;  %v557_v57 = vpop.xlane.xlu0 %556 }
 0x34a   :  { %2235 = vrcp.f32 %v557_v57  ;;  %v578_v4 = vpack.c.bf16 %v570_v59, %v570_v59 }
 0x34b   :  { %v580_v60 = vpack.c.bf16 %v572_v54, %v572_v54  ;;  %v290_v61 = vpack.c.bf16 %v2141_v55, %v2141_v55  ;;  %v289_v62 = vpack.c.bf16 %v2140_v56, %v2140_v56  ;;  %v2353_v54 = vmov 32.0  }
 0x34c   :  { %2237 = vrcp.f32 %v2353_v54 }
 0x34d   :  { %v663_v63 = vsel %vm585_vm2, %v289_v62, 0  ;;  %v682_v0 = vsel %vm585_vm2, %v290_v61, 0  ;;  %1944 = vmatmul.msk.bf16.vlgmr.msra.gmra.mxu0 %vm298_vm1, %v580_v60 }
 0x34e   :  { %672 = vmatpush.bf16.msrb.mxu2 %v663_v63  ;;  %691 = vmatpush.bf16.msrb.mxu3 %v682_v0 }
 0x350   :  { %v2236_v6 = vpop.eup %2235 }
 0x351   :  { %v573_v7 = vmul.f32 %v2236_v6, %v2611_v23  ;;  %1942 = vmatmul.msk.bf16.vlgmr.msrb.gmra.mxu2 %vm298_vm1, %v578_v4  ;;  %1943 = vmatmul.msk.bf16.vlgmr.msrb.gmra.mxu3 %vm298_vm1, %v579_v3 }
 0x352   :  { %792 = vmatpush.bf16.msra.mxu2 %v2057_v28  ;;  %v2238_v55 = vpop.eup %2237 }
 0x353   :  { %v581_v5 = vpack.c.bf16 %v573_v7, %v573_v7  ;;  %v809_v56 = vmul.f32 32.0, %v2238_v55  ;;  %vm813_vm5 = vweird.f32 %v2238_v55 }
 0x354   :  { %v598_v8 = vpop.f32.mrf.mxu2 }
 0x355   :  { %1945 = vmatmul.msk.bf16.vlgmr.msra.gmra.mxu1 %vm298_vm1, %v581_v5  ;;  %v810_v57 = vsub.f32 1.0, %v809_v56  ;;  %v2059_v5 = vld [vmem:[%s2414_s19 + $0x8] sm:$0xff] }
 0x356   :  { %793 = vmatpush.bf16.msra.mxu2 %v2056_v29  ;;  %890 = vmatpush.bf16.msra.mxu3 %v2059_v5 }
 0x357   :  { %v811_v58 = vmul.f32 %v2238_v55, %v810_v57 }
 0x359   :  { %v812_v59 = vadd.f32 %v2238_v55, %v811_v58 }
 0x35c   :  { %v600_v9 = vpop.f32.mrf.mxu2 }
 0x38b   :  { %v617_v10 = vpop.f32.mrf.mxu3 }
 0x393   :  { %v619_v11 = vpop.f32.mrf.mxu3 }
 0x3a2   :  { %v636_v12 = vpop.f32.mrf.mxu0 }
 0x3aa   :  { %v638_v13 = vpop.f32.mrf.mxu0 }
 0x3ba   :  { %v655_v14 = vpop.f32.mrf.mxu1 }
 0x3bb   :  { %v2147_v15 = vpack.i.bf16 %v655_v14, %v636_v12 }
 0x3bd   :  { %2148 = vrot.lane.b32.xlu0 %v2147_v15, %s2350_s21 }
 0x3c2   :  { %v657_v16 = vpop.f32.mrf.mxu1 }
 0x3ca   :  { %v712_v17 = vpop.f32.mrf.mxu0 }
 0x3d2   :  { %v714_v18 = vpop.f32.mrf.mxu0  ;;  %v731_v20 = vpop.f32.mrf.mxu1 }
 0x3d3   :  { %v2157_v21 = vpack.i.bf16 %v731_v20, %v712_v17 }
 0x3d4   :  { %v674_v22 = vpop.f32.mrf.mxu2  ;;  %v693_v23 = vpop.f32.mrf.mxu3 }
 0x3d5   :  { %v2152_v24 = vpack.i.bf16 %v693_v23, %v674_v22  ;;  %2158 = vrot.lane.b32.xlu2 %v2157_v21, %s2351_s25 }
 0x3d7   :  { %2153 = vrot.lane.b32.xlu1 %v2152_v24, %s2352_s22  ;;  %v2190_v24 = vld [vmem:[%s2404_s8] ss:$0 sm:$0xff]  ;;  %s2886_s8 = sld [smem:[#allocation5_spill]] }
 0x3da   :  { %v733_v25 = vpop.f32.mrf.mxu1 }
 0x3dc   :  { %v676_v26 = vpop.f32.mrf.mxu2  ;;  %v695_v27 = vpop.f32.mrf.mxu3 }
 0x3dd   :  { %v2191_v27 = vld [vmem:[%s2409_s14] ss:$0 sm:$0xff]  ;;  %s2887_s14 = sld [smem:[#allocation6_spill]] }
 0x42f   :  { %v2149_v30 = vpop.permute.xlu0 %2148  ;;  %v2159_v33 = vpop.permute.xlu2 %2158 }
 0x430   :  { %v2151_v31 = vunpack.i.h.bf16 %v2149_v30  ;;  %v2150_v32 = vunpack.i.l.bf16 %v2149_v30  ;;  %v2161_v39 = vunpack.i.h.bf16 %v2159_v33  ;;  %v2160_v40 = vunpack.i.l.bf16 %v2159_v33 }
 0x432   :  { %v760_v37 = vsel %vm298_vm1, %v617_v10, %v2151_v31  ;;  %v759_v38 = vsel %vm298_vm1, %v598_v8, %v2150_v32  ;;  %v2058_v10 = vld [vmem:[%s2414_s19] sm:$0xff]  ;;  %s2888_s19 = sld [smem:[#allocation8_spill]] }
 0x433   :  { %891 = vmatpush.bf16.msra.mxu3 %v2058_v10  ;;  %v2066_v10 = vld [vmem:[%s2884_s29] sm:$0xff] }
 0x449   :  { %v2154_v34 = vpop.permute.xlu1 %2153 }
 0x44a   :  { %v2156_v35 = vunpack.i.h.bf16 %v2154_v34  ;;  %v2155_v36 = vunpack.i.l.bf16 %v2154_v34 }
 0x44c   :  { %v762_v19 = vsel %vm761_vm3, %v759_v38, %v2155_v36  ;;  %v763_v41 = vsel %vm761_vm3, %v760_v37, %v2156_v35 }
 0x44d   :  { %v765_v42 = vsel %vm764_vm4, %v762_v19, %v2160_v40  ;;  %v766_v43 = vsel %vm764_vm4, %v763_v41, %v2161_v39  ;;  %v2063_v39 = vld [vmem:[%s2424_s30 + $0x18] sm:$0xff]  ;;  %v2062_v40 = vld [vmem:[%s2424_s30 + $0x10] sm:$0xff]  ;;  %v2061_v19 = vld [vmem:[%s2424_s30 + $0x8] sm:$0xff] }
 0x44e   :  { %v767_v44 = vpack.c.bf16 %v766_v43, %v765_v42  ;;  %936 = vmatpush.bf16.msrb.mxu0 %v2063_v39  ;;  %v2060_v41 = vld [vmem:[%s2424_s30] sm:$0xff]  ;;  %s2891_s30 = sld [smem:[#allocation12_spill]] }
 0x44f   :  { %v2192_v43 = vld [vmem:[%s2419_s24] ss:$0 sm:$0xff]  ;;  %s2890_s24 = sld [smem:[#allocation11_spill]] }
 0x450   :  { %1954 = vmatmul.msk.bf16.vlgmr.msra.gmra.mxu2 %vm187_vm0, %v767_v44 }
 0x452   :  { %937 = vmatpush.bf16.msrb.mxu0 %v2062_v40  ;;  %v2287_v40 = vld [vmem:[%s2369_s9] sm:$0xff] }
 0x456   :  { %938 = vmatpush.bf16.msrb.mxu0 %v2061_v19 }
 0x45a   :  { %939 = vmatpush.bf16.msrb.mxu0 %v2060_v41  ;;  %v2288_v41 = vld [vmem:[%s2369_s9 + $0x8] sm:$0xff]  ;;  %s2889_s9 = sld [smem:[#allocation10_spill]] }
 0x4d3   :  { %v795_v46 = vpop.f32.mrf.mxu2 }
 0x4d4   :  { %v796_v47 = vadd.f32 %v2189_v45, %v795_v46 }
 0x4d6   :  { %v800_v48 = vadd.f32 %v796_v47, %v2523_v1  ;;  %v2653_v1 = vsel %vm813_vm5, %v2238_v55, %v812_v59 }
 0x4d8   :  { %v802_v49 = vsel %vm187_vm0, %v800_v48, 0.0 }
 0x4d9   :  { %803 = vadd.xlane.f32.xlu1 %v802_v49 }
 0x4db   :  { %v797_v50 = vpop.f32.mrf.mxu2 }
 0x4dc   :  { %v798_v51 = vadd.f32 %v2189_v45, %v797_v50  ;;  %v2193_v50 = vld [vmem:[%s2429_s6] ss:$0 sm:$0xff]  ;;  %s2892_s6 = sld [smem:[#allocation15_spill]] }
 0x4de   :  { %v801_v52 = vadd.f32 %v798_v51, %v2526_v2 }
 0x4e0   :  { %v805_v53 = vsel %vm187_vm0, %v801_v52, 0.0 }
 0x4e1   :  { %806 = vadd.xlane.f32.xlu2 %v805_v53 }
 0x54c   :  { %v804_v60 = vpop.xlane.xlu1 %803 }
 0x54d   :  { %v815_v61 = vmul.f32 %v2653_v1, %v804_v60 }
 0x54f   :  { %v817_v62 = vsub.f32 %v800_v48, %v815_v61 }
 0x551   :  { %v819_v2 = vmul.f32 %v817_v62, %v817_v62 }
 0x553   :  { %v821_v63 = vsel %vm187_vm0, %v819_v2, 0.0 }
 0x554   :  { %v807_v0 = vpop.xlane.xlu2 %806  ;;  %822 = vadd.xlane.f32.xlu0 %v821_v63 }
 0x555   :  { %v816_v3 = vmul.f32 %v2653_v1, %v807_v0 }
 0x557   :  { %v818_v4 = vsub.f32 %v801_v52, %v816_v3 }
 0x559   :  { %v820_v6 = vmul.f32 %v818_v4, %v818_v4 }
 0x55b   :  { %v824_v7 = vsel %vm187_vm0, %v820_v6, 0.0 }
 0x55c   :  { %825 = vadd.xlane.f32.xlu1 %v824_v7  ;;  %v2067_v7 = vld [vmem:[%s2884_s29 + $0x8] sm:$0xff] }
 0x55d   :  { %1095 = vmatpush.bf16.msrb.mxu2 %v2067_v7 }
 0x561   :  { %1096 = vmatpush.bf16.msrb.mxu2 %v2066_v10 }
 0x5c7   :  { %v823_v8 = vpop.xlane.xlu0 %822 }
 0x5c8   :  { %v827_v9 = vmul.f32 %v823_v8, %v2653_v1  ;;  %v2065_v8 = vld [vmem:[%s2885_s3 + $0x8] sm:$0xff] }
 0x5c9   :  { %1063 = vmatpush.bf16.msrb.mxu1 %v2065_v8 }
 0x5ca   :  { %v829_v11 = vadd.f32 1e-05, %v827_v9 }
 0x5cc   :  { %2239 = vrsqrt.f32 %v829_v11  ;;  %vm837_vm7 = vweird.f32 %v829_v11 }
 0x5cf   :  { %v826_v12 = vpop.xlane.xlu1 %825 }
 0x5d0   :  { %v828_v13 = vmul.f32 %v826_v12, %v2653_v1  ;;  %v2064_v12 = vld [vmem:[%s2885_s3] sm:$0xff] }
 0x5d1   :  { %1064 = vmatpush.bf16.msrb.mxu1 %v2064_v12 }
 0x5d2   :  { %v2240_v14 = vpop.eup %2239  ;;  %v830_v15 = vadd.f32 1e-05, %v828_v13 }
 0x5d3   :  { %v832_v16 = vmul.f32 %v2240_v14, %v829_v11  ;;  %vm838_vm6 = vweird.f32 %v2240_v14 }
 0x5d4   :  { %2241 = vrsqrt.f32 %v830_v15  ;;  %vm839_vm8 = vmor %vm837_vm7, %vm838_vm6  ;;  %vm847_vm10 = vweird.f32 %v830_v15 }
 0x5d5   :  { %v833_v17 = vmul.f32 %v2240_v14, %v832_v16 }
 0x5d7   :  { %v834_v18 = vmul.f32 0.5, %v833_v17 }
 0x5d9   :  { %v835_v20 = vsub.f32 1.5, %v834_v18 }
 0x5da   :  { %v2242_v21 = vpop.eup %2241 }
 0x5db   :  { %v836_v22 = vmul.f32 %v2240_v14, %v835_v20  ;;  %v842_v23 = vmul.f32 %v2242_v21, %v830_v15  ;;  %vm848_vm9 = vweird.f32 %v2242_v21 }
 0x5dc   :  { %vm849_vm11 = vmor %vm847_vm10, %vm848_vm9 }
 0x5dd   :  { %v840_v25 = vsel %vm839_vm8, %v2240_v14, %v836_v22  ;;  %v843_v26 = vmul.f32 %v2242_v21, %v842_v23 }
 0x5de   :  { %v851_v28 = vmul.f32 %v840_v25, %v817_v62 }
 0x5df   :  { %v844_v29 = vmul.f32 0.5, %v843_v26 }
 0x5e0   :  { %v856_v30 = vmul.f32 %v2190_v24, %v851_v28  ;;  %v2194_v28 = vld [vmem:[%s2886_s8] ss:$0 sm:$0xff] }
 0x5e1   :  { %v845_v31 = vsub.f32 1.5, %v844_v29 }
 0x5e2   :  { %v861_v32 = vadd.f32 %v2191_v27, %v856_v30 }
 0x5e3   :  { %v846_v33 = vmul.f32 %v2242_v21, %v845_v31 }
 0x5e4   :  { %863 = vst.msk [vmem:[%s2519_s20] sm:$0xff] %vm187_vm0, %v861_v32 }
 0x5e5   :  { %v850_v34 = vsel %vm849_vm11, %v2242_v21, %v846_v33 }
 0x5e6   :  { %v852_v35 = vmul.f32 %v850_v34, %v818_v4 }
 0x5e8   :  { %v857_v36 = vmul.f32 %v2190_v24, %v852_v35 }
 0x5ea   :  { %v862_v37 = vadd.f32 %v2191_v27, %v857_v36 }
 0x5ec   :  { %864 = vst.msk [vmem:[%s2519_s20 + $0x8] sm:$0xff] %vm187_vm0, %v862_v37  ;;  %v865_v38 = vpack.c.bf16 %v862_v37, %v861_v32 }
 0x5ee   :  { %1963 = vmatmul.msk.bf16.vlgmr.msra.gmra.mxu3 %vm187_vm0, %v865_v38 }
 0x671   :  { %v893_v42 = vpop.f32.mrf.mxu3 }
 0x672   :  { %v894_v44 = vadd.f32 %v2192_v43, %v893_v42 }
 0x674   :  { %v898_v47 = vmax.f32 %v894_v44, 0.0  ;;  %v2196_v44 = vld [vmem:[%s2888_s19] ss:$0 sm:$0xff] }
 0x679   :  { %v895_v45 = vpop.f32.mrf.mxu3 }
 0x67a   :  { %v896_v46 = vadd.f32 %v2192_v43, %v895_v45 }
 0x67c   :  { %v899_v48 = vmax.f32 %v896_v46, 0.0 }
 0x67e   :  { %v900_v49 = vpack.c.bf16 %v899_v48, %v898_v47 }
 0x680   :  { %1980 = vmatmul.msk.bf16.vlgmr.msrb.gmra.mxu0 %vm928_vm12, %v900_v49 }
 0x6fd   :  { %v941_v51 = vpop.f32.mrf.mxu0 }
 0x6fe   :  { %v942_v52 = vadd.f32 %v2193_v50, %v941_v51 }
 0x700   :  { %v946_v53 = vadd.f32 %v942_v52, %v861_v32  ;;  %v2195_v32 = vld [vmem:[%s2887_s14] ss:$0 sm:$0xff] }
 0x702   :  { %v948_v54 = vsel %vm187_vm0, %v946_v53, 0.0 }
 0x703   :  { %949 = vadd.xlane.f32.xlu2 %v948_v54 }
 0x705   :  { %v943_v55 = vpop.f32.mrf.mxu0 }
 0x706   :  { %v944_v56 = vadd.f32 %v2193_v50, %v943_v55 }
 0x708   :  { %v947_v57 = vadd.f32 %v944_v56, %v862_v37 }
 0x70a   :  { %v951_v58 = vsel %vm187_vm0, %v947_v57, 0.0 }
 0x70b   :  { %952 = vadd.xlane.f32.xlu1 %v951_v58 }
 0x776   :  { %v950_v59 = vpop.xlane.xlu2 %949 }
 0x777   :  { %v954_v60 = vmul.f32 %v950_v59, %v2653_v1 }
 0x779   :  { %v956_v61 = vsub.f32 %v946_v53, %v954_v60 }
 0x77b   :  { %v958_v62 = vmul.f32 %v956_v61, %v956_v61 }
 0x77d   :  { %v960_v2 = vsel %vm187_vm0, %v958_v62, 0.0 }
 0x77e   :  { %v953_v63 = vpop.xlane.xlu1 %952  ;;  %961 = vadd.xlane.f32.xlu0 %v960_v2 }
 0x77f   :  { %v955_v0 = vmul.f32 %v953_v63, %v2653_v1 }
 0x781   :  { %v957_v3 = vsub.f32 %v947_v57, %v955_v0 }
 0x783   :  { %v959_v4 = vmul.f32 %v957_v3, %v957_v3 }
 0x785   :  { %v963_v6 = vsel %vm187_vm0, %v959_v4, 0.0 }
 0x786   :  { %964 = vadd.xlane.f32.xlu2 %v963_v6 }
 0x7f1   :  { %v962_v5 = vpop.xlane.xlu0 %961 }
 0x7f2   :  { %v966_v9 = vmul.f32 %v962_v5, %v2653_v1 }
 0x7f4   :  { %v968_v11 = vadd.f32 1e-05, %v966_v9 }
 0x7f6   :  { %2243 = vrsqrt.f32 %v968_v11  ;;  %vm976_vm14 = vweird.f32 %v968_v11 }
 0x7f9   :  { %v965_v13 = vpop.xlane.xlu2 %964 }
 0x7fa   :  { %v967_v14 = vmul.f32 %v965_v13, %v2653_v1 }
 0x7fc   :  { %v2244_v15 = vpop.eup %2243  ;;  %v969_v16 = vadd.f32 1e-05, %v967_v14 }
 0x7fd   :  { %v971_v17 = vmul.f32 %v2244_v15, %v968_v11  ;;  %vm977_vm13 = vweird.f32 %v2244_v15 }
 0x7fe   :  { %2245 = vrsqrt.f32 %v969_v16  ;;  %vm978_vm15 = vmor %vm976_vm14, %vm977_vm13  ;;  %vm986_vm6 = vweird.f32 %v969_v16 }
 0x7ff   :  { %v972_v18 = vmul.f32 %v2244_v15, %v971_v17 }
 0x801   :  { %v973_v20 = vmul.f32 0.5, %v972_v18 }
 0x803   :  { %v974_v21 = vsub.f32 1.5, %v973_v20 }
 0x804   :  { %v2246_v22 = vpop.eup %2245 }
 0x805   :  { %v975_v23 = vmul.f32 %v2244_v15, %v974_v21  ;;  %v981_v24 = vmul.f32 %v2246_v22, %v969_v16  ;;  %vm987_vm5 = vweird.f32 %v2246_v22 }
 0x806   :  { %vm988_vm7 = vmor %vm986_vm6, %vm987_vm5 }
 0x807   :  { %v979_v25 = vsel %vm978_vm15, %v2244_v15, %v975_v23  ;;  %v982_v26 = vmul.f32 %v2246_v22, %v981_v24 }
 0x808   :  { %v990_v29 = vmul.f32 %v979_v25, %v956_v61  ;;  %v2197_v25 = vld [vmem:[%s2889_s9] ss:$0 sm:$0xff] }
 0x809   :  { %v983_v27 = vmul.f32 0.5, %v982_v26 }
 0x80a   :  { %v995_v33 = vmul.f32 %v2194_v28, %v990_v29 }
 0x80b   :  { %v984_v30 = vsub.f32 1.5, %v983_v27 }
 0x80c   :  { %v2691_v36 = vadd.f32 %v2195_v32, %v995_v33 }
 0x80d   :  { %v985_v31 = vmul.f32 %v2246_v22, %v984_v30 }
 0x80e   :  { %v1035_v19 = vadd.f32 %v2287_v40, %v2691_v36 }
 0x80f   :  { %v989_v34 = vsel %vm988_vm7, %v2246_v22, %v985_v31 }
 0x810   :  { %v991_v35 = vmul.f32 %v989_v34, %v957_v3 }
 0x812   :  { %v996_v37 = vmul.f32 %v2194_v28, %v991_v35 }
 0x814   :  { %v2693_v38 = vadd.f32 %v2195_v32, %v996_v37 }
 0x816   :  { %v1038_v39 = vpack.c.bf16 %v2693_v38, %v2691_v36  ;;  %v1036_v42 = vadd.f32 %v2288_v41, %v2693_v38 }
 0x818   :  { %1998 = vmatmul.msk.bf16.vlgmr.msrb.gmra.mxu2 %vm187_vm0, %v1038_v39  ;;  %v1037_v43 = vpack.c.bf16 %v1036_v42, %v1035_v19 }
 0x81a   :  { %1989 = vmatmul.msk.bf16.vlgmr.msrb.gmra.mxu1 %vm187_vm0, %v1037_v43 }
 0x897   :  { %v1066_v45 = vpop.f32.mrf.mxu1 }
 0x898   :  { %v1067_v46 = vadd.f32 %v2196_v44, %v1066_v45 }
 0x89a   :  { %1111 = vrot.lane.b32.xlu2 %v1067_v46, %s2349_s17  ;;  %1105 = vrot.lane.b32.xlu0 %v1067_v46, %s2347_s5  ;;  %v1123_v49 = vpack.c.bf16 %v1067_v46, %v1067_v46 }
 0x89b   :  { %v1098_v21 = vpop.f32.mrf.mxu2 }
 0x89c   :  { %v1160_v52 = vunpack.c.l.b16 %v1123_v49  ;;  %v2727_v31 = vadd.f32 %v2197_v25, %v1098_v21 }
 0x89e   :  { %v1161_v54 = vpack.c.b16 %v1160_v52, %v1160_v52  ;;  %v1151_v35 = vpack.c.bf16 %v2727_v31, %v2727_v31 }
 0x89f   :  { %v1068_v47 = vpop.f32.mrf.mxu1 }
 0x8a0   :  { %v1069_v48 = vadd.f32 %v2196_v44, %v1068_v47  ;;  %v1451_v42 = vsel %vm585_vm2, %v1151_v35, 0 }
 0x8a2   :  { %1107 = vrot.lane.b32.xlu1 %v1069_v48, %s2347_s5  ;;  %1117 = vrot.lane.b32.xlu2 %v1067_v46, %s2346_s0  ;;  %v1124_v50 = vpack.c.bf16 %v1069_v48, %v1069_v48 }
 0x8a3   :  { %1119 = vrot.lane.b32.xlu0 %v1069_v48, %s2346_s0  ;;  %v1100_v27 = vpop.f32.mrf.mxu2 }
 0x8a4   :  { %v1184_v51 = vunpack.c.l.b16 %v1124_v50  ;;  %v2729_v32 = vadd.f32 %v2197_v25, %v1100_v27 }
 0x8a6   :  { %v1185_v53 = vpack.c.b16 %v1184_v51, %v1184_v51  ;;  %v1152_v37 = vpack.c.bf16 %v2729_v32, %v2729_v32 }
 0x8a8   :  { %v1470_v43 = vsel %vm585_vm2, %v1152_v37, 0 }
 0x8aa   :  { %1113 = vrot.lane.b32.xlu1 %v1069_v48, %s2349_s17  ;;  %1186 = vrot.lane.b32.xlu2 %v1185_v53, %s2348_s13 }
 0x8ab   :  { %1162 = vrot.lane.b32.xlu0 %v1161_v54, %s2348_s13 }
 0x8f4   :  { %v1112_v55 = vpop.permute.xlu2 %1111 }
 0x8f5   :  { %v1127_v7 = vpack.c.bf16 %v1112_v55, %v1112_v55 }
 0x8f7   :  { %v1256_v10 = vunpack.c.l.b16 %v1127_v7 }
 0x8f9   :  { %v1257_v15 = vpack.c.b16 %v1256_v10, %v1256_v10 }
 0x8fc   :  { %v1118_v56 = vpop.permute.xlu2 %1117 }
 0x8fd   :  { %v1129_v16 = vpack.c.bf16 %v1118_v56, %v1118_v56 }
 0x8ff   :  { %v1304_v18 = vunpack.c.l.b16 %v1129_v16 }
 0x901   :  { %v1305_v20 = vpack.c.b16 %v1304_v18, %v1304_v18 }
 0x904   :  { %v1187_v57 = vpop.permute.xlu2 %1186 }
 0x905   :  { %v1192_v58 = vsel %vm298_vm1, %v1187_v57, 0 }
 0x906   :  { %1201 = vmatpush.bf16.xpose.msra.mxu0 %v1192_v58 }
 0x90c   :  { %v1106_v59 = vpop.permute.xlu0 %1105 }
 0x90d   :  { %v1125_v60 = vpack.c.bf16 %v1106_v59, %v1106_v59  ;;  %2000 = vmatmul.msk.bf16.vlgmr.msra.gmra.mxu0 %vm298_vm1, %v1124_v50 }
 0x90f   :  { %v1208_v61 = vunpack.c.l.b16 %v1125_v60 }
 0x911   :  { %v1209_v62 = vpack.c.b16 %v1208_v61, %v1208_v61 }
 0x913   :  { %1210 = vrot.lane.b32.xlu0 %v1209_v62, %s2348_s13 }
 0x914   :  { %v1108_v2 = vpop.permute.xlu1 %1107 }
 0x915   :  { %v1126_v63 = vpack.c.bf16 %v1108_v2, %v1108_v2  ;;  %v1120_v0 = vpop.permute.xlu0 %1119 }
 0x916   :  { %v1130_v3 = vpack.c.bf16 %v1120_v0, %v1120_v0 }
 0x917   :  { %v1232_v4 = vunpack.c.l.b16 %v1126_v63 }
 0x918   :  { %v1328_v6 = vunpack.c.l.b16 %v1130_v3 }
 0x919   :  { %v1233_v5 = vpack.c.b16 %v1232_v4, %v1232_v4 }
 0x91a   :  { %v1329_v8 = vpack.c.b16 %v1328_v6, %v1328_v6 }
 0x91b   :  { %1234 = vrot.lane.b32.xlu1 %v1233_v5, %s2348_s13 }
 0x91c   :  { %1330 = vrot.lane.b32.xlu2 %v1329_v8, %s2348_s13  ;;  %v1114_v9 = vpop.permute.xlu1 %1113 }
 0x91d   :  { %v1128_v11 = vpack.c.bf16 %v1114_v9, %v1114_v9  ;;  %v1163_v12 = vpop.permute.xlu0 %1162 }
 0x91e   :  { %v1168_v13 = vsel %vm298_vm1, %v1163_v12, 0 }
 0x91f   :  { %v1280_v14 = vunpack.c.l.b16 %v1128_v11  ;;  %1177 = vmatpush.bf16.xpose.msrb.mxu3 %v1168_v13 }
 0x921   :  { %v1281_v17 = vpack.c.b16 %v1280_v14, %v1280_v14  ;;  %v2162_v14 = vpack.i.bf16 %v2727_v31, %v2729_v32 }
 0x923   :  { %1258 = vrot.lane.b32.xlu1 %v1257_v15, %s2348_s13  ;;  %1282 = vrot.lane.b32.xlu0 %v1281_v17, %s2348_s13 }
 0x926   :  { %1999 = vmatmul.msk.bf16.vlgmr.msrb.gmra.mxu3 %vm298_vm1, %v1123_v49 }
 0x92b   :  { %1306 = vrot.lane.b32.xlu1 %v1305_v20, %s2348_s13 }
 0x976   :  { %v1331_v28 = vpop.permute.xlu2 %1330 }
 0x977   :  { %v1336_v33 = vsel %vm298_vm1, %v1331_v28, 0 }
 0x985   :  { %v1211_v22 = vpop.permute.xlu0 %1210 }
 0x986   :  { %v1216_v23 = vsel %vm298_vm1, %v1211_v22, 0 }
 0x987   :  { %1225 = vmatpush.bf16.xpose.msra.mxu1 %v1216_v23 }
 0x98a   :  { %v1203_v24 = vpop.f32.mrf.mxu0 }
 0x98b   :  { %v1354_v26 = vsel %vm298_vm1, %v1203_v24, -inf }
 0x98c   :  { %1355 = vmax.xlane.f32.xlu1 %v1354_v26 }
 0x98d   :  { %v1235_v29 = vpop.permute.xlu1 %1234 }
 0x98e   :  { %v1240_v30 = vsel %vm298_vm1, %v1235_v29, 0  ;;  %2001 = vmatmul.msk.bf16.vlgmr.msra.gmra.mxu1 %vm298_vm1, %v1125_v60 }
 0x98f   :  { %1249 = vmatpush.bf16.xpose.msra.mxu2 %v1240_v30 }
 0x992   :  { %v1205_v34 = vpop.f32.mrf.mxu0 }
 0x995   :  { %v1259_v39 = vpop.permute.xlu1 %1258  ;;  %v1283_v40 = vpop.permute.xlu0 %1282 }
 0x996   :  { %v1264_v19 = vsel %vm298_vm1, %v1259_v39, 0  ;;  %v1288_v41 = vsel %vm298_vm1, %v1283_v40, 0  ;;  %2002 = vmatmul.msk.bf16.vlgmr.msra.gmra.mxu2 %vm298_vm1, %v1126_v63 }
 0x997   :  { %1345 = vmatpush.bf16.xpose.msrb.mxu2 %v1336_v33  ;;  %1273 = vmatpush.bf16.xpose.msra.mxu3 %v1264_v19 }
 0x998   :  { %1297 = vmatpush.bf16.xpose.msrb.mxu0 %v1288_v41 }
 0x99d   :  { %v1307_v44 = vpop.permute.xlu1 %1306 }
 0x99e   :  { %v1312_v45 = vsel %vm298_vm1, %v1307_v44, 0  ;;  %2003 = vmatmul.msk.bf16.vlgmr.msra.gmra.mxu3 %vm298_vm1, %v1127_v7 }
 0x99f   :  { %1460 = vmatpush.bf16.msrb.mxu3 %v1451_v42  ;;  %2004 = vmatmul.msk.bf16.vlgmr.msrb.gmra.mxu0 %vm298_vm1, %v1128_v11 }
 0x9a0   :  { %1479 = vmatpush.bf16.msra.mxu0 %v1470_v43  ;;  %1321 = vmatpush.bf16.xpose.msrb.mxu1 %v1312_v45 }
 0x9a6   :  { %2006 = vmatmul.msk.bf16.vlgmr.msrb.gmra.mxu2 %vm298_vm1, %v1130_v3 }
 0x9a7   :  { %2005 = vmatmul.msk.bf16.vlgmr.msrb.gmra.mxu1 %vm298_vm1, %v1129_v16 }
 0x9a9   :  { %v1179_v46 = vpop.f32.mrf.mxu3 }
 0x9aa   :  { %v1351_v47 = vsel %vm298_vm1, %v1179_v46, -inf }
 0x9ab   :  { %1352 = vmax.xlane.f32.xlu2 %v1351_v47 }
 0x9b1   :  { %v1181_v48 = vpop.f32.mrf.mxu3 }
 0x9ff   :  { %v1356_v56 = vpop.xlane.xlu1 %1355 }
 0xa00   :  { %v1376_v59 = vsub.f32 %v1203_v24, %v1356_v56 }
 0xa02   :  { %v1385_v3 = vmul.f32 1.442695, %v1376_v59 }
 0xa0b   :  { %v1227_v49 = vpop.f32.mrf.mxu1 }
 0xa0c   :  { %v1357_v50 = vsel %vm298_vm1, %v1227_v49, -inf }
 0xa0d   :  { %1358 = vmax.xlane.f32.xlu2 %v1357_v50 }
 0xa13   :  { %v1229_v51 = vpop.f32.mrf.mxu1 }
 0xa19   :  { %v1251_v52 = vpop.f32.mrf.mxu2 }
 0xa1a   :  { %v1360_v53 = vsel %vm298_vm1, %v1251_v52, -inf }
 0xa1b   :  { %1361 = vmax.xlane.f32.xlu0 %v1360_v53 }
 0xa1c   :  { %v1299_v54 = vpop.f32.mrf.mxu0 }
 0xa1d   :  { %v1366_v55 = vsel %vm298_vm1, %v1299_v54, -inf }
 0xa1e   :  { %1367 = vmax.xlane.f32.xlu2 %v1366_v55  ;;  %v1353_v57 = vpop.xlane.xlu2 %1352  ;;  %v2167_v55 = vpack.i.bf16 %v2729_v32, %v2727_v31 }
 0xa1f   :  { %v1375_v58 = vsub.f32 %v1179_v46, %v1353_v57 }
 0xa21   :  { %v1383_v60 = vmul.f32 1.442695, %v1375_v58  ;;  %v1253_v61 = vpop.f32.mrf.mxu2  ;;  %v1275_v62 = vpop.f32.mrf.mxu3 }
 0xa22   :  { %v1363_v2 = vsel %vm298_vm1, %v1275_v62, -inf }
 0xa23   :  { %2247 = vpow2.f32 %v1383_v60  ;;  %1364 = vmax.xlane.f32.xlu0 %v1363_v2 }
 0xa24   :  { %v1301_v63 = vpop.f32.mrf.mxu0  ;;  %v2751_v0 = vpop.f32.mrf.mxu1  ;;  %2249 = vpow2.f32 %v1385_v3 }
 0xa25   :  { %v1369_v8 = vsel %vm298_vm1, %v2751_v0, -inf }
 0xa29   :  { %v2248_v4 = vpop.eup %2247  ;;  %v1277_v6 = vpop.f32.mrf.mxu3 }
 0xa2a   :  { %v1347_v7 = vpop.f32.mrf.mxu2  ;;  %v1399_v5 = vsel %vm298_vm1, %v2248_v4, 0.0  ;;  %v2250_v10 = vpop.eup %2249 }
 0xa2b   :  { %1400 = vadd.xlane.f32.xlu1 %v1399_v5  ;;  %1370 = vmax.xlane.f32.xlu0 %v1369_v8  ;;  %v1372_v12 = vsel %vm298_vm1, %v1347_v7, -inf  ;;  %v1402_v13 = vsel %vm298_vm1, %v2250_v10, 0.0 }
 0xa2c   :  { %v1325_v9 = vpop.f32.mrf.mxu1 }
 0xa32   :  { %v1349_v11 = vpop.f32.mrf.mxu2 }
 0xa33   :  { %1373 = vmax.xlane.f32.xlu1 %v1372_v12  ;;  %1403 = vadd.xlane.f32.xlu0 %v1402_v13 }
 0xa4c   :  { %2163 = vrot.lane.b32.xlu1 %v2162_v14, %s2347_s5 }
 0xa54   :  { %1147 = vrot.lane.b32.xlu1 %v2729_v32, %s2346_s0 }
 0xa5c   :  { %1145 = vrot.lane.b32.xlu1 %v2727_v31, %s2346_s0 }
 0xa80   :  { %v1359_v15 = vpop.xlane.xlu2 %1358 }
 0xa81   :  { %v1377_v16 = vsub.f32 %v1227_v49, %v1359_v15 }
 0xa83   :  { %v1387_v17 = vmul.f32 1.442695, %v1377_v16 }
 0xa85   :  { %2251 = vpow2.f32 %v1387_v17 }
 0xa8b   :  { %v2765_v18 = vpop.eup %2251 }
 0xa8c   :  { %v1405_v20 = vsel %vm298_vm1, %v2765_v18, 0.0 }
 0xa8d   :  { %1406 = vadd.xlane.f32.xlu2 %v1405_v20 }
 0xa8e   :  { %v1362_v21 = vpop.xlane.xlu0 %1361 }
 0xa8f   :  { %v1378_v22 = vsub.f32 %v1251_v52, %v1362_v21 }
 0xa91   :  { %v1368_v23 = vpop.xlane.xlu2 %1367  ;;  %v1389_v24 = vmul.f32 1.442695, %v1378_v22 }
 0xa92   :  { %v1380_v25 = vsub.f32 %v1299_v54, %v1368_v23 }
 0xa93   :  { %2253 = vpow2.f32 %v1389_v24 }
 0xa94   :  { %v1393_v26 = vmul.f32 1.442695, %v1380_v25 }
 0xa96   :  { %v1365_v27 = vpop.xlane.xlu0 %1364  ;;  %2255 = vpow2.f32 %v1393_v26 }
 0xa97   :  { %v1379_v28 = vsub.f32 %v1275_v62, %v1365_v27 }
 0xa99   :  { %v2769_v29 = vpop.eup %2253  ;;  %v1391_v30 = vmul.f32 1.442695, %v1379_v28 }
 0xa9a   :  { %v1408_v33 = vsel %vm298_vm1, %v2769_v29, 0.0 }
 0xa9b   :  { %2257 = vpow2.f32 %v1391_v30  ;;  %1409 = vadd.xlane.f32.xlu2 %v1408_v33 }
 0xa9c   :  { %v2773_v37 = vpop.eup %2255 }
 0xa9d   :  { %v1414_v40 = vsel %vm298_vm1, %v2773_v37, 0.0 }
 0xa9e   :  { %v1401_v34 = vpop.xlane.xlu1 %1400  ;;  %v1371_v35 = vpop.xlane.xlu0 %1370 }
 0xa9f   :  { %2259 = vrcp.f32 %v1401_v34  ;;  %v1381_v47 = vsub.f32 %v2751_v0, %v1371_v35 }
 0xaa1   :  { %v2775_v39 = vpop.eup %2257  ;;  %v1395_v50 = vmul.f32 1.442695, %v1381_v47 }
 0xaa2   :  { %v1411_v19 = vsel %vm298_vm1, %v2775_v39, 0.0 }
 0xaa3   :  { %1415 = vadd.xlane.f32.xlu2 %v1414_v40  ;;  %1412 = vadd.xlane.f32.xlu0 %v1411_v19 }
 0xaa5   :  { %v2260_v41 = vpop.eup %2259 }
 0xaa6   :  { %v1431_v42 = vmul.f32 %v2260_v41, %v2248_v4  ;;  %v1374_v43 = vpop.xlane.xlu1 %1373  ;;  %v1404_v44 = vpop.xlane.xlu0 %1403 }
 0xaa7   :  { %v1382_v45 = vsub.f32 %v1347_v7, %v1374_v43  ;;  %2261 = vrcp.f32 %v1404_v44 }
 0xaa8   :  { %v1439_v46 = vpack.c.bf16 %v1431_v42, %v1431_v42 }
 0xaa9   :  { %v1397_v48 = vmul.f32 1.442695, %v1382_v45 }
 0xaaa   :  { %2007 = vmatmul.msk.bf16.vlgmr.msrb.gmra.mxu3 %vm298_vm1, %v1439_v46 }
 0xaab   :  { %2263 = vpow2.f32 %v1397_v48 }
 0xaac   :  { %2265 = vpow2.f32 %v1395_v50 }
 0xaad   :  { %v2262_v49 = vpop.eup %2261 }
 0xaae   :  { %v1432_v51 = vmul.f32 %v2262_v49, %v2250_v10 }
 0xab0   :  { %v1440_v52 = vpack.c.bf16 %v1432_v51, %v1432_v51 }
 0xab1   :  { %v2264_v53 = vpop.eup %2263 }
 0xab2   :  { %v1420_v54 = vsel %vm298_vm1, %v2264_v53, 0.0  ;;  %2008 = vmatmul.msk.bf16.vlgmr.msra.gmra.mxu0 %vm298_vm1, %v1440_v52  ;;  %v2787_v56 = vpop.eup %2265 }
 0xab3   :  { %1421 = vadd.xlane.f32.xlu2 %v1420_v54  ;;  %v1417_v57 = vsel %vm298_vm1, %v2787_v56, 0.0 }
 0xab7   :  { %2168 = vrot.lane.b32.xlu0 %v2167_v55, %s2349_s17 }
 0xabb   :  { %1418 = vadd.xlane.f32.xlu2 %v1417_v57 }
 0xabe   :  { %v2164_v58 = vpop.permute.xlu1 %2163 }
 0xabf   :  { %v2166_v59 = vunpack.i.h.bf16 %v2164_v58  ;;  %v2165_v60 = vunpack.i.l.bf16 %v2164_v58 }
 0xac1   :  { %v1153_v61 = vpack.c.bf16 %v2166_v59, %v2166_v59  ;;  %v1154_v62 = vpack.c.bf16 %v2165_v60, %v2165_v60  ;;  %v2069_v60 = vld [vmem:[%s2890_s24 + $0x8] sm:$0xff] }
 0xac3   :  { %v1489_v2 = vsel %vm585_vm2, %v1153_v61, 0  ;;  %v1508_v63 = vsel %vm585_vm2, %v1154_v62, 0  ;;  %v2068_v61 = vld [vmem:[%s2890_s24] sm:$0xff] }
 0xac4   :  { %1498 = vmatpush.bf16.msra.mxu1 %v1489_v2  ;;  %1517 = vmatpush.bf16.msra.mxu2 %v1508_v63 }
 0xac6   :  { %v1148_v31 = vpop.permute.xlu1 %1147 }
 0xac7   :  { %v1158_v32 = vpack.c.bf16 %v1148_v31, %v1148_v31 }
 0xac9   :  { %v1584_v0 = vsel %vm585_vm2, %v1158_v32, 0 }
 0xaca   :  { %1593 = vmatpush.bf16.msrb.mxu2 %v1584_v0 }
 0xace   :  { %v1146_v3 = vpop.permute.xlu1 %1145 }
 0xacf   :  { %v1157_v4 = vpack.c.bf16 %v1146_v3, %v1146_v3 }
 0xad1   :  { %v1565_v6 = vsel %vm585_vm2, %v1157_v4, 0 }
 0xad2   :  { %1574 = vmatpush.bf16.msrb.mxu1 %v1565_v6 }
 0xb00   :  { %v1407_v7 = vpop.xlane.xlu2 %1406 }
 0xb01   :  { %2267 = vrcp.f32 %v1407_v7 }
 0xb07   :  { %v2268_v5 = vpop.eup %2267 }
 0xb08   :  { %v1433_v8 = vmul.f32 %v2268_v5, %v2765_v18 }
 0xb0a   :  { %v1441_v9 = vpack.c.bf16 %v1433_v8, %v1433_v8 }
 0xb0c   :  { %2009 = vmatmul.msk.bf16.vlgmr.msra.gmra.mxu1 %vm298_vm1, %v1441_v9 }
 0xb0e   :  { %v1410_v10 = vpop.xlane.xlu2 %1409 }
 0xb0f   :  { %2269 = vrcp.f32 %v1410_v10 }
 0xb15   :  { %v2270_v11 = vpop.eup %2269 }
 0xb16   :  { %v1434_v12 = vmul.f32 %v2270_v11, %v2769_v29  ;;  %v1416_v14 = vpop.xlane.xlu2 %1415  ;;  %v1413_v15 = vpop.xlane.xlu0 %1412 }
 0xb17   :  { %2271 = vrcp.f32 %v1413_v15 }
 0xb18   :  { %v1442_v13 = vpack.c.bf16 %v1434_v12, %v1434_v12  ;;  %2273 = vrcp.f32 %v1416_v14 }
 0xb1a   :  { %2010 = vmatmul.msk.bf16.vlgmr.msra.gmra.mxu2 %vm298_vm1, %v1442_v13  ;;  %v2198_v13 = vld [vmem:[%s2891_s30] ss:$0 sm:$0xff] }
 0xb1d   :  { %v2272_v17 = vpop.eup %2271 }
 0xb1e   :  { %v2274_v18 = vpop.eup %2273  ;;  %v1435_v23 = vmul.f32 %v2272_v17, %v2775_v39 }
 0xb1f   :  { %v1436_v27 = vmul.f32 %v2274_v18, %v2773_v37 }
 0xb20   :  { %v1443_v40 = vpack.c.bf16 %v1435_v23, %v1435_v23 }
 0xb21   :  { %v1444_v41 = vpack.c.bf16 %v1436_v27, %v1436_v27 }
 0xb26   :  { %v1422_v16 = vpop.xlane.xlu2 %1421 }
 0xb27   :  { %2275 = vrcp.f32 %v1422_v16 }
 0xb29   :  { %v2169_v20 = vpop.permute.xlu0 %2168 }
 0xb2a   :  { %v2171_v21 = vunpack.i.h.bf16 %v2169_v20  ;;  %v2170_v22 = vunpack.i.l.bf16 %v2169_v20 }
 0xb2c   :  { %v1156_v24 = vpack.c.bf16 %v2171_v21, %v2171_v21  ;;  %v1155_v25 = vpack.c.bf16 %v2170_v22, %v2170_v22 }
 0xb2d   :  { %v2276_v26 = vpop.eup %2275  ;;  %v1462_v28 = vpop.f32.mrf.mxu3 }
 0xb2e   :  { %v1438_v29 = vmul.f32 %v2276_v26, %v2264_v53  ;;  %v1419_v30 = vpop.xlane.xlu2 %1418  ;;  %v1527_v33 = vsel %vm585_vm2, %v1155_v25, 0  ;;  %v1546_v34 = vsel %vm585_vm2, %v1156_v24, 0 }
 0xb2f   :  { %2277 = vrcp.f32 %v1419_v30  ;;  %v1481_v35 = vpop.f32.mrf.mxu0  ;;  %1536 = vmatpush.bf16.msra.mxu3 %v1527_v33  ;;  %1555 = vmatpush.bf16.msrb.mxu0 %v1546_v34 }
 0xb30   :  { %v1446_v19 = vpack.c.bf16 %v1438_v29, %v1438_v29 }
 0xb32   :  { %2014 = vmatmul.msk.bf16.vlgmr.msrb.gmra.mxu2 %vm298_vm1, %v1446_v19  ;;  %2011 = vmatmul.msk.bf16.vlgmr.msra.gmra.mxu3 %vm298_vm1, %v1443_v40  ;;  %v2070_v40 = vld [vmem:[%s2892_s6] sm:$0xff] }
 0xb33   :  { %2012 = vmatmul.msk.bf16.vlgmr.msrb.gmra.mxu0 %vm298_vm1, %v1444_v41  ;;  %1654 = vmatpush.bf16.msrb.mxu3 %v2069_v60 }
 0xb35   :  { %v2278_v37 = vpop.eup %2277  ;;  %v1464_v39 = vpop.f32.mrf.mxu3 }
 0xb36   :  { %v1437_v42 = vmul.f32 %v2278_v37, %v2787_v56 }
 0xb37   :  { %v1483_v43 = vpop.f32.mrf.mxu0  ;;  %1655 = vmatpush.bf16.msrb.mxu3 %v2068_v61 }
 0xb38   :  { %v1445_v44 = vpack.c.bf16 %v1437_v42, %v1437_v42 }
 0xb3a   :  { %2013 = vmatmul.msk.bf16.vlgmr.msrb.gmra.mxu1 %vm298_vm1, %v1445_v44 }
 0xb89   :  { %v1500_v45 = vpop.f32.mrf.mxu1 }
 0xb91   :  { %v1502_v46 = vpop.f32.mrf.mxu1 }
 0xb9d   :  { %v1519_v47 = vpop.f32.mrf.mxu2 }
 0xb9e   :  { %v2172_v48 = vpack.i.bf16 %v1519_v47, %v1500_v45 }
 0xba0   :  { %2173 = vrot.lane.b32.xlu0 %v2172_v48, %s2350_s21 }
 0xba5   :  { %v1521_v49 = vpop.f32.mrf.mxu2 }
 0xbb0   :  { %v1557_v50 = vpop.f32.mrf.mxu0 }
 0xbb5   :  { %v1595_v51 = vpop.f32.mrf.mxu2  ;;  %v1538_v52 = vpop.f32.mrf.mxu3 }
 0xbb6   :  { %v2177_v53 = vpack.i.bf16 %v1557_v50, %v1538_v52  ;;  %v2199_v50 = vld [vmem:[%s2893_s23] ss:$0 sm:$0xff] }
 0xbb7   :  { %v1576_v54 = vpop.f32.mrf.mxu1 }
 0xbb8   :  { %v2182_v55 = vpack.i.bf16 %v1595_v51, %v1576_v54  ;;  %v1559_v56 = vpop.f32.mrf.mxu0  ;;  %2178 = vrot.lane.b32.xlu2 %v2177_v53, %s2352_s22  ;;  %v2200_v53 = vld [vmem:[%s2894_s26] ss:$0 sm:$0xff] }
 0xbba   :  { %2183 = vrot.lane.b32.xlu1 %v2182_v55, %s2351_s25 }
 0xbbd   :  { %v1597_v57 = vpop.f32.mrf.mxu2  ;;  %v1540_v58 = vpop.f32.mrf.mxu3 }
 0xbbf   :  { %v1578_v59 = vpop.f32.mrf.mxu1 }
 0xc12   :  { %v2174_v62 = vpop.permute.xlu0 %2173  ;;  %v2179_v31 = vpop.permute.xlu2 %2178 }
 0xc13   :  { %v2176_v2 = vunpack.i.h.bf16 %v2174_v62  ;;  %v2175_v63 = vunpack.i.l.bf16 %v2174_v62  ;;  %v2181_v32 = vunpack.i.h.bf16 %v2179_v31  ;;  %v2180_v0 = vunpack.i.l.bf16 %v2179_v31  ;;  %v2075_v31 = vld [vmem:[%s2895_s28 + $0x18] sm:$0xff] }
 0xc14   :  { %1791 = vmatpush.bf16.msra.mxu1 %v2075_v31 }
 0xc15   :  { %v1624_v3 = vsel %vm298_vm1, %v1481_v35, %v2176_v2  ;;  %v1623_v4 = vsel %vm298_vm1, %v1462_v28, %v2175_v63 }
 0xc16   :  { %v1626_v8 = vsel %vm761_vm3, %v1624_v3, %v2181_v32  ;;  %v1625_v9 = vsel %vm761_vm3, %v1623_v4, %v2180_v0  ;;  %v2074_v32 = vld [vmem:[%s2895_s28 + $0x10] sm:$0xff]  ;;  %v2073_v0 = vld [vmem:[%s2895_s28 + $0x8] sm:$0xff]  ;;  %v2072_v3 = vld [vmem:[%s2895_s28] sm:$0xff] }
 0xc18   :  { %1792 = vmatpush.bf16.msra.mxu1 %v2074_v32 }
 0xc1c   :  { %1793 = vmatpush.bf16.msra.mxu1 %v2073_v0 }
 0xc20   :  { %1794 = vmatpush.bf16.msra.mxu1 %v2072_v3 }
 0xc2c   :  { %v2184_v6 = vpop.permute.xlu1 %2183 }
 0xc2d   :  { %v2186_v7 = vunpack.i.h.bf16 %v2184_v6  ;;  %v2185_v5 = vunpack.i.l.bf16 %v2184_v6  ;;  %v2201_v6 = vld [vmem:[%s2896_s1] ss:$0 sm:$0xff] }
 0xc2f   :  { %v1627_v10 = vsel %vm764_vm4, %v1625_v9, %v2185_v5  ;;  %v1628_v11 = vsel %vm764_vm4, %v1626_v8, %v2186_v7 }
 0xc30   :  { %v1629_v12 = vpack.c.bf16 %v1628_v11, %v1627_v10 }
 0xc32   :  { %2023 = vmatmul.msk.bf16.vlgmr.msrb.gmra.mxu3 %vm187_vm0, %v1629_v12  ;;  %v2202_v12 = vld [vmem:[%s2897_s2] ss:$0 sm:$0xff] }
 0xcb5   :  { %v1657_v14 = vpop.f32.mrf.mxu3 }
 0xcb6   :  { %v1658_v15 = vadd.f32 %v2198_v13, %v1657_v14 }
 0xcb8   :  { %v1662_v16 = vadd.f32 %v1658_v15, %v2691_v36 }
 0xcba   :  { %v1664_v17 = vsel %vm187_vm0, %v1662_v16, 0.0 }
 0xcbb   :  { %1665 = vadd.xlane.f32.xlu0 %v1664_v17 }
 0xcbd   :  { %v1659_v20 = vpop.f32.mrf.mxu3 }
 0xcbe   :  { %v1660_v18 = vadd.f32 %v2198_v13, %v1659_v20 }
 0xcc0   :  { %v1663_v21 = vadd.f32 %v1660_v18, %v2693_v38  ;;  %v2071_v38 = vld [vmem:[%s2892_s6 + $0x8] sm:$0xff] }
 0xcc1   :  { %1746 = vmatpush.bf16.msra.mxu0 %v2071_v38 }
 0xcc2   :  { %v1667_v22 = vsel %vm187_vm0, %v1663_v21, 0.0 }
 0xcc3   :  { %1668 = vadd.xlane.f32.xlu1 %v1667_v22 }
 0xcc5   :  { %1747 = vmatpush.bf16.msra.mxu0 %v2070_v40 }
 0xd2e   :  { %v1666_v23 = vpop.xlane.xlu0 %1665 }
 0xd2f   :  { %v1670_v24 = vmul.f32 %v1666_v23, %v2653_v1 }
 0xd31   :  { %v1672_v25 = vsub.f32 %v1662_v16, %v1670_v24 }
 0xd33   :  { %v1674_v26 = vmul.f32 %v1672_v25, %v1672_v25 }
 0xd35   :  { %v1676_v27 = vsel %vm187_vm0, %v1674_v26, 0.0 }
 0xd36   :  { %v1669_v36 = vpop.xlane.xlu1 %1668  ;;  %1677 = vadd.xlane.f32.xlu2 %v1676_v27 }
 0xd37   :  { %v1671_v28 = vmul.f32 %v1669_v36, %v2653_v1 }
 0xd39   :  { %v1673_v29 = vsub.f32 %v1663_v21, %v1671_v28 }
 0xd3b   :  { %v1675_v30 = vmul.f32 %v1673_v29, %v1673_v29 }
 0xd3d   :  { %v1679_v33 = vsel %vm187_vm0, %v1675_v30, 0.0 }
 0xd3e   :  { %1680 = vadd.xlane.f32.xlu0 %v1679_v33 }
 0xda9   :  { %v1678_v34 = vpop.xlane.xlu2 %1677 }
 0xdaa   :  { %v1682_v35 = vmul.f32 %v1678_v34, %v2653_v1 }
 0xdac   :  { %v1684_v19 = vadd.f32 1e-05, %v1682_v35 }
 0xdae   :  { %2279 = vrsqrt.f32 %v1684_v19  ;;  %vm1692_vm2 = vweird.f32 %v1684_v19 }
 0xdb1   :  { %v1681_v41 = vpop.xlane.xlu0 %1680 }
 0xdb2   :  { %v1683_v37 = vmul.f32 %v1681_v41, %v2653_v1 }
 0xdb4   :  { %v2280_v39 = vpop.eup %2279  ;;  %v1685_v42 = vadd.f32 1e-05, %v1683_v37 }
 0xdb5   :  { %v1687_v43 = vmul.f32 %v2280_v39, %v1684_v19  ;;  %vm1693_vm1 = vweird.f32 %v2280_v39 }
 0xdb6   :  { %2281 = vrsqrt.f32 %v1685_v42  ;;  %vm1694_vm3 = vmor %vm1692_vm2, %vm1693_vm1  ;;  %vm1702_vm8 = vweird.f32 %v1685_v42 }
 0xdb7   :  { %v1688_v44 = vmul.f32 %v2280_v39, %v1687_v43 }
 0xdb9   :  { %v1689_v45 = vmul.f32 0.5, %v1688_v44 }
 0xdbb   :  { %v1690_v46 = vsub.f32 1.5, %v1689_v45 }
 0xdbc   :  { %v2282_v47 = vpop.eup %2281 }
 0xdbd   :  { %v1691_v48 = vmul.f32 %v2280_v39, %v1690_v46  ;;  %v1697_v49 = vmul.f32 %v2282_v47, %v1685_v42  ;;  %vm1703_vm4 = vweird.f32 %v2282_v47 }
 0xdbe   :  { %vm1704_vm9 = vmor %vm1702_vm8, %vm1703_vm4 }
 0xdbf   :  { %v1695_v51 = vsel %vm1694_vm3, %v2280_v39, %v1691_v48  ;;  %v1698_v52 = vmul.f32 %v2282_v47, %v1697_v49 }
 0xdc0   :  { %v1706_v54 = vmul.f32 %v1695_v51, %v1672_v25 }
 0xdc1   :  { %v1699_v55 = vmul.f32 0.5, %v1698_v52 }
 0xdc2   :  { %v1711_v56 = vmul.f32 %v2199_v50, %v1706_v54 }
 0xdc3   :  { %v1700_v57 = vsub.f32 1.5, %v1699_v55 }
 0xdc4   :  { %v1716_v58 = vadd.f32 %v2200_v53, %v1711_v56 }
 0xdc5   :  { %v1701_v59 = vmul.f32 %v2282_v47, %v1700_v57 }
 0xdc6   :  { %2024 = vst.msk [vmem:[%s2519_s20 + $0x10] sm:$0xff] %vm187_vm0, %v1716_v58 }
 0xdc7   :  { %v1705_v60 = vsel %vm1704_vm9, %v2282_v47, %v1701_v59  ;;  %v2203_v47 = vld [vmem:[%s2504_s27] ss:$0 sm:$0xff] }
 0xdc8   :  { %v1707_v61 = vmul.f32 %v1705_v60, %v1673_v29 }
 0xdca   :  { %v1712_v62 = vmul.f32 %v2199_v50, %v1707_v61 }
 0xdcc   :  { %v1717_v2 = vadd.f32 %v2200_v53, %v1712_v62 }
 0xdce   :  { %2025 = vst.msk [vmem:[%s2519_s20 + $0x18] sm:$0xff] %vm187_vm0, %v1717_v2  ;;  %v1721_v63 = vpack.c.bf16 %v1717_v2, %v1716_v58  ;;  %s2354_s20 = smov [#allocation2]  }
 0xdcf   :  { %s1863_s27 = sshll.u32 %s2354_s20, 4  ;;  %s1864_s27 = int_to_ptr.vmem [resolvable:$true] %s1863_s27 }
 0xdd0   :  { %2034 = vmatmul.msk.bf16.vlgmr.msra.gmra.mxu0 %vm187_vm0, %v1721_v63 }
 0xe4d   :  { %v1749_v4 = vpop.f32.mrf.mxu0 }
 0xe4e   :  { %v1750_v7 = vadd.f32 %v2201_v6, %v1749_v4 }
 0xe50   :  { %v1754_v9 = vmax.f32 %v1750_v7, 0.0 }
 0xe55   :  { %v1751_v5 = vpop.f32.mrf.mxu0 }
 0xe56   :  { %v1752_v8 = vadd.f32 %v2201_v6, %v1751_v5 }
 0xe58   :  { %v1755_v10 = vmax.f32 %v1752_v8, 0.0 }
 0xe5a   :  { %v1756_v11 = vpack.c.bf16 %v1755_v10, %v1754_v9 }
 0xe5c   :  { %2051 = vmatmul.msk.bf16.vlgmr.msra.gmra.mxu1 %vm928_vm12, %v1756_v11 }
 0xed9   :  { %v1796_v13 = vpop.f32.mrf.mxu1 }
 0xeda   :  { %v1797_v14 = vadd.f32 %v2202_v12, %v1796_v13 }
 0xedc   :  { %v1801_v15 = vadd.f32 %v1797_v14, %v1716_v58 }
 0xede   :  { %v1803_v16 = vsel %vm187_vm0, %v1801_v15, 0.0 }
 0xedf   :  { %1804 = vadd.xlane.f32.xlu1 %v1803_v16 }
 0xee1   :  { %v1798_v17 = vpop.f32.mrf.mxu1 }
 0xee2   :  { %v1799_v20 = vadd.f32 %v2202_v12, %v1798_v17 }
 0xee4   :  { %v1802_v18 = vadd.f32 %v1799_v20, %v1717_v2 }
 0xee6   :  { %v1806_v21 = vsel %vm187_vm0, %v1802_v18, 0.0 }
 0xee7   :  { %1807 = vadd.xlane.f32.xlu0 %v1806_v21 }
 0xf52   :  { %v1805_v22 = vpop.xlane.xlu1 %1804 }
 0xf53   :  { %v1809_v23 = vmul.f32 %v1805_v22, %v2653_v1 }
 0xf55   :  { %v1811_v24 = vsub.f32 %v1801_v15, %v1809_v23 }
 0xf57   :  { %v1813_v25 = vmul.f32 %v1811_v24, %v1811_v24 }
 0xf59   :  { %v1815_v26 = vsel %vm187_vm0, %v1813_v25, 0.0 }
 0xf5a   :  { %v1808_v27 = vpop.xlane.xlu0 %1807  ;;  %1816 = vadd.xlane.f32.xlu1 %v1815_v26 }
 0xf5b   :  { %v1810_v36 = vmul.f32 %v1808_v27, %v2653_v1 }
 0xf5d   :  { %v1812_v28 = vsub.f32 %v1802_v18, %v1810_v36 }
 0xf5f   :  { %v1814_v29 = vmul.f32 %v1812_v28, %v1812_v28 }
 0xf61   :  { %v1818_v30 = vsel %vm187_vm0, %v1814_v29, 0.0 }
 0xf62   :  { %1819 = vadd.xlane.f32.xlu0 %v1818_v30 }
 0xfcd   :  { %v1817_v33 = vpop.xlane.xlu1 %1816 }
 0xfce   :  { %v1821_v38 = vmul.f32 %v1817_v33, %v2653_v1 }
 0xfd0   :  { %v1823_v34 = vadd.f32 1e-05, %v1821_v38 }
 0xfd2   :  { %2283 = vrsqrt.f32 %v1823_v34  ;;  %vm1831_vm11 = vweird.f32 %v1823_v34 }
 0xfd5   :  { %v1820_v35 = vpop.xlane.xlu0 %1819 }
 0xfd6   :  { %v1822_v40 = vmul.f32 %v1820_v35, %v2653_v1  ;;  %v2204_v1 = vld [vmem:[%s2509_s4] ss:$0 sm:$0xff]  ;;  %s2301_s4 = sshra.s32 %s1866_s7, 4  ;;  %s2302_s4 = int_to_ptr.hbm [resolvable:$true] %s2301_s4 }
 0xfd7   :  { %s2303_s10 = scalar_lea.hbm %s2302_s4, 16  ;;  %p2306_p1 = scmp.lt.s32.totalorder %s2302_s4, %s2514_s12 }
 0xfd8   :  { %v2284_v19 = vpop.eup %2283  ;;  %v1824_v41 = vadd.f32 1e-05, %v1822_v40  ;;  %p2304_p0 = scmp.ne.s32.totalorder %s2302_s4, %s2303_s10  ;;  %p2307_p2 = scmp.lt.s32.totalorder %s2305_s11, %s2303_s10 }
 0xfd9   :  { %v1826_v37 = vmul.f32 %v2284_v19, %v1823_v34  ;;  %vm1832_vm10 = vweird.f32 %v2284_v19 }
 0xfda   :  { %2285 = vrsqrt.f32 %v1824_v41  ;;  %vm1833_vm12 = vmor %vm1831_vm11, %vm1832_vm10  ;;  %vm1841_vm14 = vweird.f32 %v1824_v41  ;;  %p2308_p3 = por %p2307_p2, %p2306_p1 }
 0xfdb   :  { %v1827_v39 = vmul.f32 %v2284_v19, %v1826_v37 }
 0xfdc   :  { %p2309_p4 = pnand %p2308_p3, %p2304_p0 }
 0xfdd   :  { %v1828_v42 = vmul.f32 0.5, %v1827_v39 }
 0xfdf   :  { %v1829_v43 = vsub.f32 1.5, %v1828_v42 }
 0xfe0   :  { %v2286_v44 = vpop.eup %2285 }
 0xfe1   :  { %v1830_v45 = vmul.f32 %v2284_v19, %v1829_v43  ;;  %v1836_v46 = vmul.f32 %v2286_v44, %v1824_v41  ;;  %vm1842_vm13 = vweird.f32 %v2286_v44 }
 0xfe2   :  { %vm1843_vm15 = vmor %vm1841_vm14, %vm1842_vm13 }
 0xfe3   :  { %v1834_v48 = vsel %vm1833_vm12, %v2284_v19, %v1830_v45  ;;  %v1837_v49 = vmul.f32 %v2286_v44, %v1836_v46 }
 0xfe4   :  { %v1845_v50 = vmul.f32 %v1834_v48, %v1811_v24 }
 0xfe5   :  { %v1838_v51 = vmul.f32 0.5, %v1837_v49 }
 0xfe6   :  { %v1850_v52 = vmul.f32 %v2203_v47, %v1845_v50 }
 0xfe7   :  { %v1839_v53 = vsub.f32 1.5, %v1838_v51 }
 0xfe8   :  { %v1855_v54 = vadd.f32 %v2204_v1, %v1850_v52 }
 0xfe9   :  { %v1840_v55 = vmul.f32 %v2286_v44, %v1839_v53 }
 0xfea   :  { %1857 = vst.msk [vmem:[#allocation2] sm:$0xff] %vm187_vm0, %v1855_v54 }
 0xfeb   :  { %v1844_v56 = vsel %vm1843_vm15, %v2286_v44, %v1840_v55 }
 0xfec   :  { %v1846_v57 = vmul.f32 %v1844_v56, %v1812_v28 }
 0xfee   :  { %v1851_v58 = vmul.f32 %v2203_v47, %v1846_v57 }
 0xff0   :  { %v1856_v59 = vadd.f32 %v2204_v1, %v1851_v58 }
 0xff2   :  { %1858 = vst.msk [vmem:[#allocation2 + $0x8] sm:$0xff] %vm187_vm0, %v1856_v59 }
 0xff3   :  { %2312 = shalt.err (!%p2309_p4)
}
 0xff4   :  { %s2355_s15 = smov 128  }
 0xff5   :  { %1871 = dma.vmem_to_hbm [thread:$0]  %s1864_s27, 256, %s1866_s7, [#allocation3], %s2355_s15, %s2355_s15, %s2350_s21  }
 0xff6   :  { %2313 = dma.done.wait [#allocation3], 256  }
 0xff7   :  { %2314 = vsyncadd [#allocation3], 4294967040 }
 0xff8   :  { %1880 = vsyncpa [#allocation3], 1 }

</bundles_post_ra>
